<compile_context>
chip_gen: v7x
topology: tpu7x:2x2x1
jax: 0.10.0
libtpu: 0.0.40
codegen_flags: <defaults>
</compile_context>

<pallas_src>
import jax
import jax.numpy as jnp
from jax.experimental import pallas as pl
from jax.experimental.pallas import tpu as pltpu

# ----------------------------- small BERT config -----------------------------
BATCH = 2
SEQ = 8
HIDDEN = 32
NUM_HEADS = 4
HEAD_DIM = HIDDEN // NUM_HEADS
INTERMEDIATE = 64
NUM_LAYERS = 2
VOCAB = 100
MAX_POS = 16
TYPE_VOCAB = 2
NUM_LABELS = 5
LN_EPS = 1e-12
VEC_LANES = 128            # lane width of the packed small-parameter slab

MXU_DTYPE = jnp.bfloat16   # MXU operand dtype (f32 accumulation everywhere)


# ------------------------------- kernel helpers -------------------------------
def _mm(a, w):
    """MXU matmul with bf16 operands and f32 accumulation."""
    return jnp.dot(a.astype(MXU_DTYPE), w.astype(MXU_DTYPE),
                   preferred_element_type=jnp.float32)


def _ln(v, g, b):
    """Row-wise LayerNorm, statistics in f32."""
    mean = jnp.mean(v, axis=-1, keepdims=True)
    d = v - mean
    var = jnp.mean(d * d, axis=-1, keepdims=True)
    return d * jax.lax.rsqrt(var + LN_EPS) * g + b


# ------------------------------ fused BERT kernel ------------------------------
def _bert_fused_kernel(emb_ref, amask_ref, misc_ref, clsw_ref,
                       wqkv_ref, wo_ref, w1_ref, w2_ref, vec_ref,
                       hidden_ref, probs_ref, logits_ref):
    """Full BERT forward for one batch element (grid=(B,))."""
    f32 = jnp.float32
    H, I, DH = HIDDEN, INTERMEDIATE, HEAD_DIM

    emb = emb_ref[...].astype(f32)             # (S, H) summed embeddings
    amask = amask_ref[...].astype(f32)         # (1, S) 0/1 key mask
    add_mask = (1.0 - amask) * -10000.0        # HF additive mask, built in-kernel

    misc = misc_ref[...].astype(f32)           # (1, 128) packed globals
    emb_g = misc[:, 0:H]
    emb_b = misc[:, H:2 * H]
    cls_b = misc[:, 2 * H:2 * H + NUM_LABELS]

    # ---- embedding LayerNorm (fused into the kernel) ----
    x = _ln(emb, emb_g, emb_b)
    hidden_ref[0] = x.astype(hidden_ref.dtype)

    scale = 1.0 / (DH ** 0.5)

    # ---- static layer loop: the whole encoder stack in one kernel ----
    for l in range(NUM_LAYERS):
        wqkv = wqkv_ref[l]                     # (H, 3H) bf16
        wo = wo_ref[l]                         # (H, H)  bf16
        w1 = w1_ref[l]                         # (H, I)  bf16
        w2 = w2_ref[l]                         # (I, H)  bf16
        vec = vec_ref[l].astype(f32)           # (3, 128) packed small params
        bqkv = vec[0:1, 0:3 * H]               # (1, 3H)
        bo = vec[1:2, 0:H]
        ln1g = vec[1:2, H:2 * H]
        ln1b = vec[1:2, 2 * H:3 * H]
        b2 = vec[1:2, 3 * H:4 * H]
        b1 = vec[2:3, 0:I]
        ln2g = vec[2:3, I:I + H]
        ln2b = vec[2:3, I + H:I + 2 * H]

        # Fused QKV projection: one MXU pass over the [H, 3H] weight.
        qkv = _mm(x, wqkv) + bqkv              # (S, 3H) f32
        q = qkv[:, 0:H]
        k = qkv[:, H:2 * H]
        v = qkv[:, 2 * H:3 * H]

        ctx_heads = []
        prob_heads = []
        for h in range(NUM_HEADS):             # static (fully unrolled) head loop
            s0, s1 = h * DH, (h + 1) * DH
            q_h, k_h, v_h = q[:, s0:s1], k[:, s0:s1], v[:, s0:s1]
            s = jax.lax.dot_general(
                q_h.astype(MXU_DTYPE), k_h.astype(MXU_DTYPE),
                (((1,), (1,)), ((), ())),
                preferred_element_type=f32) * scale + add_mask      # (S, S)
            s = s - jnp.max(s, axis=-1, keepdims=True)
            e = jnp.exp(s)
            p = e / jnp.sum(e, axis=-1, keepdims=True)              # f32 softmax
            prob_heads.append(p)
            ctx_heads.append(_mm(p, v_h))                           # (S, DH)

        # Lane-dense probs store (one (S, nH*S) slab per layer, no masked
        # per-head partial stores) and a single output-projection matmul on the
        # concatenated head contexts.
        probs_ref[l] = jnp.concatenate(prob_heads, axis=1).astype(probs_ref.dtype)
        ctx = jnp.concatenate(ctx_heads, axis=1)                    # (S, H)
        attn = _mm(ctx, wo) + bo

        # residual add fused into LayerNorm 1
        x1 = _ln(attn + x, ln1g, ln1b)

        # FFN: w1 + GELU + w2; residual fused into LayerNorm 2
        # TODO(synk): HF BERT uses exact erf-GELU; tanh approximation used here.
        h_mid = jax.nn.gelu(_mm(x1, w1) + b1, approximate=True)
        ffn = _mm(h_mid, w2) + b2
        x = _ln(ffn + x1, ln2g, ln2b)
        hidden_ref[l + 1] = x.astype(hidden_ref.dtype)

    # ---- [CLS] classifier head (fused) ----
    cls = x[0:1, :]                                                 # (1, H)
    logits_ref[...] = (_mm(cls, clsw_ref[...]) + cls_b).astype(logits_ref.dtype)


def _fused_forward(packed, emb, amask):
    """One pallas_call for the whole forward. emb: [B,S,H], amask: [B,1,S]."""
    B = emb.shape[0]
    L, S, H = NUM_LAYERS, SEQ, HIDDEN

    def rep(shape):
        nd = len(shape)
        return pl.BlockSpec(shape, lambda b, _nd=nd: (0,) * _nd)

    hidden_all, probs_all, logits3 = pl.pallas_call(
        _bert_fused_kernel,
        out_shape=(
            jax.ShapeDtypeStruct((B, L + 1, S, H), jnp.float32),
            jax.ShapeDtypeStruct((B, L, S, NUM_HEADS * S), jnp.float32),
            jax.ShapeDtypeStruct((B, 1, NUM_LABELS), jnp.float32),
        ),
        grid=(B,),
        in_specs=[
            pl.BlockSpec((None, S, H), lambda b: (b, 0, 0)),         # emb (per-b)
            pl.BlockSpec((None, 1, S), lambda b: (b, 0, 0)),         # 0/1 mask (per-b)
            rep((1, VEC_LANES)),                                     # misc slab
            rep((H, NUM_LABELS)),                                    # classifier W
            rep((L, H, 3 * H)),                                      # fused QKV weights
            rep((L, H, H)),                                          # attn out proj
            rep((L, H, INTERMEDIATE)),                               # FFN w1
            rep((L, INTERMEDIATE, H)),                               # FFN w2
            rep((L, 3, VEC_LANES)),                                  # packed small params
        ],
        out_specs=(
            pl.BlockSpec((None, L + 1, S, H), lambda b: (b, 0, 0, 0)),
            pl.BlockSpec((None, L, S, NUM_HEADS * S), lambda b: (b, 0, 0, 0)),
            pl.BlockSpec((None, 1, NUM_LABELS), lambda b: (b, 0, 0)),
        ),
        compiler_params=pltpu.CompilerParams(
            dimension_semantics=("parallel",)),
    )(emb, amask, packed["misc"], packed["cls_w"],
      packed["wqkv"], packed["wo"], packed["w1"], packed["w2"], packed["vec"])
    return hidden_all, probs_all, logits3


# ------------------------------ parameter setup ------------------------------
def init_params(key):
    def nrm(k, shape, scale=0.02):
        return (scale * jax.random.normal(k, shape)).astype(jnp.float32)

    keys = iter(jax.random.split(key, 256))
    params = {
        "word_emb": nrm(next(keys), (VOCAB, HIDDEN)),
        "pos_emb": nrm(next(keys), (MAX_POS, HIDDEN)),
        "type_emb": nrm(next(keys), (TYPE_VOCAB, HIDDEN)),
        "emb_ln_g": jnp.ones((HIDDEN,), jnp.float32),
        "emb_ln_b": jnp.zeros((HIDDEN,), jnp.float32),
        "layers": [],
        "cls_w": nrm(next(keys), (HIDDEN, NUM_LABELS)),
        "cls_b": jnp.zeros((NUM_LABELS,), jnp.float32),
    }
    for _ in range(NUM_LAYERS):
        layer = {
            "wq": nrm(next(keys), (HIDDEN, HIDDEN)),
            "bq": jnp.zeros((HIDDEN,), jnp.float32),
            "wk": nrm(next(keys), (HIDDEN, HIDDEN)),
            "bk": jnp.zeros((HIDDEN,), jnp.float32),
            "wv": nrm(next(keys), (HIDDEN, HIDDEN)),
            "bv": jnp.zeros((HIDDEN,), jnp.float32),
            "wo": nrm(next(keys), (HIDDEN, HIDDEN)),
            "bo": jnp.zeros((HIDDEN,), jnp.float32),
            "ln1_g": jnp.ones((HIDDEN,), jnp.float32),
            "ln1_b": jnp.zeros((HIDDEN,), jnp.float32),
            "w1": nrm(next(keys), (HIDDEN, INTERMEDIATE)),
            "b1": jnp.zeros((INTERMEDIATE,), jnp.float32),
            "w2": nrm(next(keys), (INTERMEDIATE, HIDDEN)),
            "b2": jnp.zeros((HIDDEN,), jnp.float32),
            "ln2_g": jnp.ones((HIDDEN,), jnp.float32),
            "ln2_b": jnp.zeros((HIDDEN,), jnp.float32),
        }
        params["layers"].append(layer)
    return params


def pack_params(params):
    """One-time packing (hoisted out of the jitted forward, per perf review).

    Stacks per-layer MXU weights into leading-L bf16 arrays and packs all tiny
    1-row params into dense 128-lane slabs."""
    H, I = HIDDEN, INTERMEDIATE
    layers = params["layers"]

    wqkv = jnp.stack([jnp.concatenate([p["wq"], p["wk"], p["wv"]], axis=1)
                      for p in layers]).astype(MXU_DTYPE)            # (L, H, 3H)
    wo = jnp.stack([p["wo"] for p in layers]).astype(MXU_DTYPE)      # (L, H, H)
    w1 = jnp.stack([p["w1"] for p in layers]).astype(MXU_DTYPE)      # (L, H, I)
    w2 = jnp.stack([p["w2"] for p in layers]).astype(MXU_DTYPE)      # (L, I, H)

    vec_rows = []
    for p in layers:
        r0 = jnp.zeros((VEC_LANES,), jnp.float32).at[0:3 * H].set(
            jnp.concatenate([p["bq"], p["bk"], p["bv"]]))            # bqkv | pad
        r1 = jnp.concatenate([p["bo"], p["ln1_g"], p["ln1_b"], p["b2"]])   # 4*32
        r2 = jnp.concatenate([p["b1"], p["ln2_g"], p["ln2_b"]])            # 64+32+32
        vec_rows.append(jnp.stack([r0, r1, r2]))
    vec = jnp.stack(vec_rows)                                        # (L, 3, 128)

    misc = jnp.zeros((1, VEC_LANES), jnp.float32)
    misc = (misc.at[0, 0:H].set(params["emb_ln_g"])
                .at[0, H:2 * H].set(params["emb_ln_b"])
                .at[0, 2 * H:2 * H + NUM_LABELS].set(params["cls_b"]))

    return {
        "word_emb": params["word_emb"],
        "pos_emb": params["pos_emb"],
        "type_emb": params["type_emb"],
        "misc": misc,
        "cls_w": params["cls_w"],          # tiny; f32, cast to bf16 at MXU inside kernel
        "wqkv": wqkv, "wo": wo, "w1": w1, "w2": w2, "vec": vec,
    }


# -------------------------------- model forward -------------------------------
@jax.jit
def _bert_forward_impl(packed, input_ids, attention_mask, token_type_ids):
    B, S = input_ids.shape
    pos_ids = jnp.arange(S)
    emb = (packed["word_emb"][input_ids]
           + packed["pos_emb"][pos_ids][None, :, :]
           + packed["type_emb"][token_type_ids])                    # (B, S, H)

    amask = attention_mask.astype(jnp.float32)[:, None, :]          # (B, 1, S)

    hidden_all, probs_all, logits3 = _fused_forward(packed, emb, amask)

    last_hidden_state = hidden_all[:, NUM_LAYERS]
    hidden_states = tuple(hidden_all[:, i] for i in range(NUM_LAYERS + 1))
    # probs were stored lane-dense as (S, nH*S); unfold to (B, nH, S, S).
    attentions = tuple(
        jnp.transpose(probs_all[:, l].reshape(B, S, NUM_HEADS, S), (0, 2, 1, 3))
        for l in range(NUM_LAYERS))
    logits = logits3[:, 0, :]

    output = {
        "last_hidden_state": last_hidden_state,
        "hidden_states": hidden_states,
        "attentions": attentions,
    }
    return output, logits


def bert_forward(packed, input_ids, attention_mask=None, token_type_ids=None):
    """Mirrors Bert.forward: returns (output_dict, logits)."""
    B, S = input_ids.shape
    if attention_mask is None:
        attention_mask = jnp.ones((B, S), jnp.int32)
    if token_type_ids is None:
        token_type_ids = jnp.zeros((B, S), jnp.int32)
    return _bert_forward_impl(packed, input_ids, attention_mask, token_type_ids)


# ------------------------------------ main ------------------------------------
if __name__ == "__main__":
    key = jax.random.PRNGKey(0)
    pkey, dkey = jax.random.split(key)
    params = init_params(pkey)
    packed = pack_params(params)       # one-time packing, outside the jitted path

    input_ids = jax.random.randint(dkey, (BATCH, SEQ), 0, VOCAB, dtype=jnp.int32)
    attention_mask = jnp.ones((BATCH, SEQ), jnp.int32)
    token_type_ids = jnp.zeros((BATCH, SEQ), jnp.int32)

    output, logits = bert_forward(packed, input_ids, attention_mask, token_type_ids)
    jax.block_until_ready(logits)
    jax.block_until_ready(output["last_hidden_state"])

    assert logits.shape == (BATCH, NUM_LABELS)
    assert output["last_hidden_state"].shape == (BATCH, SEQ, HIDDEN)
    assert len(output["hidden_states"]) == NUM_LAYERS + 1
    assert len(output["attentions"]) == NUM_LAYERS
    assert output["attentions"][0].shape == (BATCH, NUM_HEADS, SEQ, SEQ)
    assert bool(jnp.all(jnp.isfinite(logits)))
    assert bool(jnp.all(jnp.isfinite(output["last_hidden_state"])))
    # attention rows are probability distributions
    row_sums = jnp.sum(output["attentions"][0], axis=-1)
    assert bool(jnp.all(jnp.abs(row_sums - 1.0) < 1e-3))

    print("KERNEL_OK")
</pallas_src>

<mosaic_0001>
module attributes {stable_mosaic.version = 11 : i64} {
  func.func @_bert_fused_kernel(%arg0: i32, %arg1: memref<1x8x32xf32, #tpu.memory_space<vmem>>, %arg2: memref<1x1x8xf32, #tpu.memory_space<vmem>>, %arg3: memref<1x128xf32, #tpu.memory_space<vmem>>, %arg4: memref<32x5xf32, #tpu.memory_space<vmem>>, %arg5: memref<2x32x96xbf16, #tpu.memory_space<vmem>>, %arg6: memref<2x32x32xbf16, #tpu.memory_space<vmem>>, %arg7: memref<2x32x64xbf16, #tpu.memory_space<vmem>>, %arg8: memref<2x64x32xbf16, #tpu.memory_space<vmem>>, %arg9: memref<2x3x128xf32, #tpu.memory_space<vmem>>, %arg10: memref<1x3x8x32xf32, #tpu.memory_space<vmem>>, %arg11: memref<1x2x8x32xf32, #tpu.memory_space<vmem>>, %arg12: memref<1x1x5xf32, #tpu.memory_space<vmem>>) attributes {dimension_semantics = [#tpu.dimension_semantics<parallel>], iteration_bounds = array<i64: 2>, scalar_prefetch = 0 : i64, scratch_operands = 0 : i64, tpu.core_type = #tpu.core_type<tc>, window_params = [{transform_indices = @transform_0, window_bounds = array<i64: 1, 8, 32>}, {transform_indices = @transform_1, window_bounds = array<i64: 1, 1, 8>}, {pipeline_mode = #tpu.pipeline_mode<synchronous>, transform_indices = @transform_2, window_bounds = array<i64: 1, 128>}, {pipeline_mode = #tpu.pipeline_mode<synchronous>, transform_indices = @transform_3, window_bounds = array<i64: 32, 5>}, {pipeline_mode = #tpu.pipeline_mode<synchronous>, transform_indices = @transform_4, window_bounds = array<i64: 2, 32, 96>}, {pipeline_mode = #tpu.pipeline_mode<synchronous>, transform_indices = @transform_5, window_bounds = array<i64: 2, 32, 32>}, {pipeline_mode = #tpu.pipeline_mode<synchronous>, transform_indices = @transform_6, window_bounds = array<i64: 2, 32, 64>}, {pipeline_mode = #tpu.pipeline_mode<synchronous>, transform_indices = @transform_7, window_bounds = array<i64: 2, 64, 32>}, {pipeline_mode = #tpu.pipeline_mode<synchronous>, transform_indices = @transform_8, window_bounds = array<i64: 2, 3, 128>}, {transform_indices = @transform_9, window_bounds = array<i64: 1, 3, 8, 32>}, {transform_indices = @transform_10, window_bounds = array<i64: 1, 2, 8, 32>}, {transform_indices = @transform_11, window_bounds = array<i64: 1, 1, 5>}]} {
    %c0 = arith.constant 0 : index
    %c0_0 = arith.constant 0 : index
    %c0_1 = arith.constant 0 : index
    %0 = vector.load %arg1[%c0, %c0_0, %c0_1] : memref<1x8x32xf32, #tpu.memory_space<vmem>>, vector<1x8x32xf32>
    %1 = vector.shape_cast %0 : vector<1x8x32xf32> to vector<8x32xf32>
    %c0_2 = arith.constant 0 : index
    %c0_3 = arith.constant 0 : index
    %c0_4 = arith.constant 0 : index
    %2 = vector.load %arg2[%c0_2, %c0_3, %c0_4] : memref<1x1x8xf32, #tpu.memory_space<vmem>>, vector<1x1x8xf32>
    %3 = vector.shape_cast %2 : vector<1x1x8xf32> to vector<1x8xf32>
    %cst = arith.constant 1.000000e+00 : f32
    %4 = vector.broadcast %cst : f32 to vector<1x8xf32>
    %5 = arith.subf %4, %3 : vector<1x8xf32>
    %cst_5 = arith.constant -1.000000e+04 : f32
    %6 = vector.broadcast %cst_5 : f32 to vector<1x8xf32>
    %7 = arith.mulf %5, %6 : vector<1x8xf32>
    %c0_6 = arith.constant 0 : index
    %c0_7 = arith.constant 0 : index
    %8 = vector.load %arg3[%c0_6, %c0_7] : memref<1x128xf32, #tpu.memory_space<vmem>>, vector<1x128xf32>
    %9 = vector.extract_strided_slice %8 {offsets = [0, 0], sizes = [1, 32], strides = [1, 1]} : vector<1x128xf32> to vector<1x32xf32>
    %10 = vector.extract_strided_slice %8 {offsets = [0, 32], sizes = [1, 32], strides = [1, 1]} : vector<1x128xf32> to vector<1x32xf32>
    %11 = vector.extract_strided_slice %8 {offsets = [0, 64], sizes = [1, 5], strides = [1, 1]} : vector<1x128xf32> to vector<1x5xf32>
    %cst_8 = arith.constant dense<0.000000e+00> : vector<8xf32>
    %12 = vector.multi_reduction <add>, %1, %cst_8 [1] : vector<8x32xf32> to vector<8xf32>
    %13 = vector.shape_cast %12 : vector<8xf32> to vector<8x1xf32>
    %cst_9 = arith.constant 3.200000e+01 : f32
    %14 = vector.broadcast %cst_9 : f32 to vector<8x1xf32>
    %15 = arith.divf %13, %14 : vector<8x1xf32>
    %16 = vector.broadcast %15 : vector<8x1xf32> to vector<8x32xf32>
    %17 = arith.subf %1, %16 : vector<8x32xf32>
    %18 = arith.mulf %17, %17 : vector<8x32xf32>
    %cst_10 = arith.constant dense<0.000000e+00> : vector<8xf32>
    %19 = vector.multi_reduction <add>, %18, %cst_10 [1] : vector<8x32xf32> to vector<8xf32>
    %20 = vector.shape_cast %19 : vector<8xf32> to vector<8x1xf32>
    %cst_11 = arith.constant 3.200000e+01 : f32
    %21 = vector.broadcast %cst_11 : f32 to vector<8x1xf32>
    %22 = arith.divf %20, %21 : vector<8x1xf32>
    %cst_12 = arith.constant 9.99999996E-13 : f32
    %23 = vector.broadcast %cst_12 : f32 to vector<8x1xf32>
    %24 = arith.addf %22, %23 : vector<8x1xf32>
    %25 = math.rsqrt %24 : vector<8x1xf32>
    %26 = vector.broadcast %25 : vector<8x1xf32> to vector<8x32xf32>
    %27 = arith.mulf %17, %26 : vector<8x32xf32>
    %28 = vector.broadcast %9 : vector<1x32xf32> to vector<8x32xf32>
    %29 = arith.mulf %27, %28 : vector<8x32xf32>
    %30 = vector.broadcast %10 : vector<1x32xf32> to vector<8x32xf32>
    %31 = arith.addf %29, %30 : vector<8x32xf32>
    %c0_13 = arith.constant 0 : index
    %c0_14 = arith.constant 0 : index
    %c0_15 = arith.constant 0 : index
    %c0_16 = arith.constant 0 : index
    %32 = vector.load %arg10[%c0_13, %c0_14, %c0_15, %c0_16] : memref<1x3x8x32xf32, #tpu.memory_space<vmem>>, vector<1x1x8x32xf32>
    %33 = vector.shape_cast %32 : vector<1x1x8x32xf32> to vector<8x32xf32>
    %34 = vector.shape_cast %31 : vector<8x32xf32> to vector<1x1x8x32xf32>
    tpu.vector_store %arg10[%c0_13, %c0_14, %c0_15, %c0_16], %34 {strides = array<i32>} : memref<1x3x8x32xf32, #tpu.memory_space<vmem>>, vector<1x1x8x32xf32>,
    %c0_17 = arith.constant 0 : index
    %c0_18 = arith.constant 0 : index
    %c0_19 = arith.constant 0 : index
    %35 = vector.load %arg5[%c0_17, %c0_18, %c0_19] : memref<2x32x96xbf16, #tpu.memory_space<vmem>>, vector<1x32x96xbf16>
    %36 = vector.shape_cast %35 : vector<1x32x96xbf16> to vector<32x96xbf16>
    %c0_20 = arith.constant 0 : index
    %c0_21 = arith.constant 0 : index
    %c0_22 = arith.constant 0 : index
    %37 = vector.load %arg6[%c0_20, %c0_21, %c0_22] : memref<2x32x32xbf16, #tpu.memory_space<vmem>>, vector<1x32x32xbf16>
    %38 = vector.shape_cast %37 : vector<1x32x32xbf16> to vector<32x32xbf16>
    %c0_23 = arith.constant 0 : index
    %c0_24 = arith.constant 0 : index
    %c0_25 = arith.constant 0 : index
    %39 = vector.load %arg7[%c0_23, %c0_24, %c0_25] : memref<2x32x64xbf16, #tpu.memory_space<vmem>>, vector<1x32x64xbf16>
    %40 = vector.shape_cast %39 : vector<1x32x64xbf16> to vector<32x64xbf16>
    %c0_26 = arith.constant 0 : index
    %c0_27 = arith.constant 0 : index
    %c0_28 = arith.constant 0 : index
    %41 = vector.load %arg8[%c0_26, %c0_27, %c0_28] : memref<2x64x32xbf16, #tpu.memory_space<vmem>>, vector<1x64x32xbf16>
    %42 = vector.shape_cast %41 : vector<1x64x32xbf16> to vector<64x32xbf16>
    %c0_29 = arith.constant 0 : index
    %c0_30 = arith.constant 0 : index
    %c0_31 = arith.constant 0 : index
    %43 = vector.load %arg9[%c0_29, %c0_30, %c0_31] : memref<2x3x128xf32, #tpu.memory_space<vmem>>, vector<1x3x128xf32>
    %44 = vector.shape_cast %43 : vector<1x3x128xf32> to vector<3x128xf32>
    %45 = vector.extract_strided_slice %44 {offsets = [0, 0], sizes = [1, 96], strides = [1, 1]} : vector<3x128xf32> to vector<1x96xf32>
    %46 = vector.extract_strided_slice %44 {offsets = [1, 0], sizes = [1, 32], strides = [1, 1]} : vector<3x128xf32> to vector<1x32xf32>
    %47 = vector.extract_strided_slice %44 {offsets = [1, 32], sizes = [1, 32], strides = [1, 1]} : vector<3x128xf32> to vector<1x32xf32>
    %48 = vector.extract_strided_slice %44 {offsets = [1, 64], sizes = [1, 32], strides = [1, 1]} : vector<3x128xf32> to vector<1x32xf32>
    %49 = vector.extract_strided_slice %44 {offsets = [1, 96], sizes = [1, 32], strides = [1, 1]} : vector<3x128xf32> to vector<1x32xf32>
    %50 = vector.extract_strided_slice %44 {offsets = [2, 0], sizes = [1, 64], strides = [1, 1]} : vector<3x128xf32> to vector<1x64xf32>
    %51 = vector.extract_strided_slice %44 {offsets = [2, 64], sizes = [1, 32], strides = [1, 1]} : vector<3x128xf32> to vector<1x32xf32>
    %52 = vector.extract_strided_slice %44 {offsets = [2, 96], sizes = [1, 32], strides = [1, 1]} : vector<3x128xf32> to vector<1x32xf32>
    %53 = arith.truncf %31 : vector<8x32xf32> to vector<8x32xbf16>
    %cst_32 = arith.constant dense<0.000000e+00> : vector<8x96xf32>
    %54 = tpu.matmul %53, %36, %cst_32 {dimension_numbers = #tpu.dot_dimension_numbers<[1], [0], [0], [1], [0, 0, 1, 1], [], []>} : vector<8x32xbf16>, vector<32x96xbf16>, vector<8x96xf32> -> vector<8x96xf32>
    %55 = vector.broadcast %45 : vector<1x96xf32> to vector<8x96xf32>
    %56 = arith.addf %54, %55 : vector<8x96xf32>
    %57 = vector.extract_strided_slice %56 {offsets = [0, 0], sizes = [8, 32], strides = [1, 1]} : vector<8x96xf32> to vector<8x32xf32>
    %58 = vector.extract_strided_slice %56 {offsets = [0, 32], sizes = [8, 32], strides = [1, 1]} : vector<8x96xf32> to vector<8x32xf32>
    %59 = vector.extract_strided_slice %56 {offsets = [0, 64], sizes = [8, 32], strides = [1, 1]} : vector<8x96xf32> to vector<8x32xf32>
    %60 = vector.extract_strided_slice %57 {offsets = [0, 0], sizes = [8, 8], strides = [1, 1]} : vector<8x32xf32> to vector<8x8xf32>
    %61 = vector.extract_strided_slice %58 {offsets = [0, 0], sizes = [8, 8], strides = [1, 1]} : vector<8x32xf32> to vector<8x8xf32>
    %62 = vector.extract_strided_slice %59 {offsets = [0, 0], sizes = [8, 8], strides = [1, 1]} : vector<8x32xf32> to vector<8x8xf32>
    %63 = arith.truncf %60 : vector<8x8xf32> to vector<8x8xbf16>
    %64 = arith.truncf %61 : vector<8x8xf32> to vector<8x8xbf16>
    %cst_33 = arith.constant dense<0.000000e+00> : vector<8x8xf32>
    %65 = tpu.matmul %63, %64, %cst_33 {dimension_numbers = #tpu.dot_dimension_numbers<[1], [1], [0], [0], [0, 0, 1, 0], [], []>} : vector<8x8xbf16>, vector<8x8xbf16>, vector<8x8xf32> -> vector<8x8xf32>
    %cst_34 = arith.constant 0.353553385 : f32
    %66 = vector.broadcast %cst_34 : f32 to vector<8x8xf32>
    %67 = arith.mulf %65, %66 : vector<8x8xf32>
    %68 = vector.broadcast %7 : vector<1x8xf32> to vector<8x8xf32>
    %69 = arith.addf %67, %68 : vector<8x8xf32>
    %cst_35 = arith.constant dense<0xFF800000> : vector<8xf32>
    %70 = vector.multi_reduction <maximumf>, %69, %cst_35 [1] : vector<8x8xf32> to vector<8xf32>
    %71 = vector.shape_cast %70 : vector<8xf32> to vector<8x1xf32>
    %72 = vector.broadcast %71 : vector<8x1xf32> to vector<8x8xf32>
    %73 = arith.subf %69, %72 : vector<8x8xf32>
    %74 = math.exp %73 : vector<8x8xf32>
    %cst_36 = arith.constant dense<0.000000e+00> : vector<8xf32>
    %75 = vector.multi_reduction <add>, %74, %cst_36 [1] : vector<8x8xf32> to vector<8xf32>
    %76 = vector.shape_cast %75 : vector<8xf32> to vector<8x1xf32>
    %77 = vector.broadcast %76 : vector<8x1xf32> to vector<8x8xf32>
    %78 = arith.divf %74, %77 : vector<8x8xf32>
    %79 = arith.truncf %78 : vector<8x8xf32> to vector<8x8xbf16>
    %80 = arith.truncf %62 : vector<8x8xf32> to vector<8x8xbf16>
    %cst_37 = arith.constant dense<0.000000e+00> : vector<8x8xf32>
    %81 = tpu.matmul %79, %80, %cst_37 {dimension_numbers = #tpu.dot_dimension_numbers<[1], [0], [0], [1], [0, 0, 1, 1], [], []>} : vector<8x8xbf16>, vector<8x8xbf16>, vector<8x8xf32> -> vector<8x8xf32>
    %82 = vector.extract_strided_slice %57 {offsets = [0, 8], sizes = [8, 8], strides = [1, 1]} : vector<8x32xf32> to vector<8x8xf32>
    %83 = vector.extract_strided_slice %58 {offsets = [0, 8], sizes = [8, 8], strides = [1, 1]} : vector<8x32xf32> to vector<8x8xf32>
    %84 = vector.extract_strided_slice %59 {offsets = [0, 8], sizes = [8, 8], strides = [1, 1]} : vector<8x32xf32> to vector<8x8xf32>
    %85 = arith.truncf %82 : vector<8x8xf32> to vector<8x8xbf16>
    %86 = arith.truncf %83 : vector<8x8xf32> to vector<8x8xbf16>
    %cst_38 = arith.constant dense<0.000000e+00> : vector<8x8xf32>
    %87 = tpu.matmul %85, %86, %cst_38 {dimension_numbers = #tpu.dot_dimension_numbers<[1], [1], [0], [0], [0, 0, 1, 0], [], []>} : vector<8x8xbf16>, vector<8x8xbf16>, vector<8x8xf32> -> vector<8x8xf32>
    %cst_39 = arith.constant 0.353553385 : f32
    %88 = vector.broadcast %cst_39 : f32 to vector<8x8xf32>
    %89 = arith.mulf %87, %88 : vector<8x8xf32>
    %90 = vector.broadcast %7 : vector<1x8xf32> to vector<8x8xf32>
    %91 = arith.addf %89, %90 : vector<8x8xf32>
    %cst_40 = arith.constant dense<0xFF800000> : vector<8xf32>
    %92 = vector.multi_reduction <maximumf>, %91, %cst_40 [1] : vector<8x8xf32> to vector<8xf32>
    %93 = vector.shape_cast %92 : vector<8xf32> to vector<8x1xf32>
    %94 = vector.broadcast %93 : vector<8x1xf32> to vector<8x8xf32>
    %95 = arith.subf %91, %94 : vector<8x8xf32>
    %96 = math.exp %95 : vector<8x8xf32>
    %cst_41 = arith.constant dense<0.000000e+00> : vector<8xf32>
    %97 = vector.multi_reduction <add>, %96, %cst_41 [1] : vector<8x8xf32> to vector<8xf32>
    %98 = vector.shape_cast %97 : vector<8xf32> to vector<8x1xf32>
    %99 = vector.broadcast %98 : vector<8x1xf32> to vector<8x8xf32>
    %100 = arith.divf %96, %99 : vector<8x8xf32>
    %101 = arith.truncf %100 : vector<8x8xf32> to vector<8x8xbf16>
    %102 = arith.truncf %84 : vector<8x8xf32> to vector<8x8xbf16>
    %cst_42 = arith.constant dense<0.000000e+00> : vector<8x8xf32>
    %103 = tpu.matmul %101, %102, %cst_42 {dimension_numbers = #tpu.dot_dimension_numbers<[1], [0], [0], [1], [0, 0, 1, 1], [], []>} : vector<8x8xbf16>, vector<8x8xbf16>, vector<8x8xf32> -> vector<8x8xf32>
    %104 = vector.extract_strided_slice %57 {offsets = [0, 16], sizes = [8, 8], strides = [1, 1]} : vector<8x32xf32> to vector<8x8xf32>
    %105 = vector.extract_strided_slice %58 {offsets = [0, 16], sizes = [8, 8], strides = [1, 1]} : vector<8x32xf32> to vector<8x8xf32>
    %106 = vector.extract_strided_slice %59 {offsets = [0, 16], sizes = [8, 8], strides = [1, 1]} : vector<8x32xf32> to vector<8x8xf32>
    %107 = arith.truncf %104 : vector<8x8xf32> to vector<8x8xbf16>
    %108 = arith.truncf %105 : vector<8x8xf32> to vector<8x8xbf16>
    %cst_43 = arith.constant dense<0.000000e+00> : vector<8x8xf32>
    %109 = tpu.matmul %107, %108, %cst_43 {dimension_numbers = #tpu.dot_dimension_numbers<[1], [1], [0], [0], [0, 0, 1, 0], [], []>} : vector<8x8xbf16>, vector<8x8xbf16>, vector<8x8xf32> -> vector<8x8xf32>
    %cst_44 = arith.constant 0.353553385 : f32
    %110 = vector.broadcast %cst_44 : f32 to vector<8x8xf32>
    %111 = arith.mulf %109, %110 : vector<8x8xf32>
    %112 = vector.broadcast %7 : vector<1x8xf32> to vector<8x8xf32>
    %113 = arith.addf %111, %112 : vector<8x8xf32>
    %cst_45 = arith.constant dense<0xFF800000> : vector<8xf32>
    %114 = vector.multi_reduction <maximumf>, %113, %cst_45 [1] : vector<8x8xf32> to vector<8xf32>
    %115 = vector.shape_cast %114 : vector<8xf32> to vector<8x1xf32>
    %116 = vector.broadcast %115 : vector<8x1xf32> to vector<8x8xf32>
    %117 = arith.subf %113, %116 : vector<8x8xf32>
    %118 = math.exp %117 : vector<8x8xf32>
    %cst_46 = arith.constant dense<0.000000e+00> : vector<8xf32>
    %119 = vector.multi_reduction <add>, %118, %cst_46 [1] : vector<8x8xf32> to vector<8xf32>
    %120 = vector.shape_cast %119 : vector<8xf32> to vector<8x1xf32>
    %121 = vector.broadcast %120 : vector<8x1xf32> to vector<8x8xf32>
    %122 = arith.divf %118, %121 : vector<8x8xf32>
    %123 = arith.truncf %122 : vector<8x8xf32> to vector<8x8xbf16>
    %124 = arith.truncf %106 : vector<8x8xf32> to vector<8x8xbf16>
    %cst_47 = arith.constant dense<0.000000e+00> : vector<8x8xf32>
    %125 = tpu.matmul %123, %124, %cst_47 {dimension_numbers = #tpu.dot_dimension_numbers<[1], [0], [0], [1], [0, 0, 1, 1], [], []>} : vector<8x8xbf16>, vector<8x8xbf16>, vector<8x8xf32> -> vector<8x8xf32>
    %126 = vector.extract_strided_slice %57 {offsets = [0, 24], sizes = [8, 8], strides = [1, 1]} : vector<8x32xf32> to vector<8x8xf32>
    %127 = vector.extract_strided_slice %58 {offsets = [0, 24], sizes = [8, 8], strides = [1, 1]} : vector<8x32xf32> to vector<8x8xf32>
    %128 = vector.extract_strided_slice %59 {offsets = [0, 24], sizes = [8, 8], strides = [1, 1]} : vector<8x32xf32> to vector<8x8xf32>
    %129 = arith.truncf %126 : vector<8x8xf32> to vector<8x8xbf16>
    %130 = arith.truncf %127 : vector<8x8xf32> to vector<8x8xbf16>
    %cst_48 = arith.constant dense<0.000000e+00> : vector<8x8xf32>
    %131 = tpu.matmul %129, %130, %cst_48 {dimension_numbers = #tpu.dot_dimension_numbers<[1], [1], [0], [0], [0, 0, 1, 0], [], []>} : vector<8x8xbf16>, vector<8x8xbf16>, vector<8x8xf32> -> vector<8x8xf32>
    %cst_49 = arith.constant 0.353553385 : f32
    %132 = vector.broadcast %cst_49 : f32 to vector<8x8xf32>
    %133 = arith.mulf %131, %132 : vector<8x8xf32>
    %134 = vector.broadcast %7 : vector<1x8xf32> to vector<8x8xf32>
    %135 = arith.addf %133, %134 : vector<8x8xf32>
    %cst_50 = arith.constant dense<0xFF800000> : vector<8xf32>
    %136 = vector.multi_reduction <maximumf>, %135, %cst_50 [1] : vector<8x8xf32> to vector<8xf32>
    %137 = vector.shape_cast %136 : vector<8xf32> to vector<8x1xf32>
    %138 = vector.broadcast %137 : vector<8x1xf32> to vector<8x8xf32>
    %139 = arith.subf %135, %138 : vector<8x8xf32>
    %140 = math.exp %139 : vector<8x8xf32>
    %cst_51 = arith.constant dense<0.000000e+00> : vector<8xf32>
    %141 = vector.multi_reduction <add>, %140, %cst_51 [1] : vector<8x8xf32> to vector<8xf32>
    %142 = vector.shape_cast %141 : vector<8xf32> to vector<8x1xf32>
    %143 = vector.broadcast %142 : vector<8x1xf32> to vector<8x8xf32>
    %144 = arith.divf %140, %143 : vector<8x8xf32>
    %145 = arith.truncf %144 : vector<8x8xf32> to vector<8x8xbf16>
    %146 = arith.truncf %128 : vector<8x8xf32> to vector<8x8xbf16>
    %cst_52 = arith.constant dense<0.000000e+00> : vector<8x8xf32>
    %147 = tpu.matmul %145, %146, %cst_52 {dimension_numbers = #tpu.dot_dimension_numbers<[1], [0], [0], [1], [0, 0, 1, 1], [], []>} : vector<8x8xbf16>, vector<8x8xbf16>, vector<8x8xf32> -> vector<8x8xf32>
    %148 = tpu.concatenate %78, %100, %122, %144 in 1 : vector<8x8xf32>, vector<8x8xf32>, vector<8x8xf32>, vector<8x8xf32> -> vector<8x32xf32>
    %c0_53 = arith.constant 0 : index
    %c0_54 = arith.constant 0 : index
    %c0_55 = arith.constant 0 : index
    %c0_56 = arith.constant 0 : index
    %149 = vector.load %arg11[%c0_53, %c0_54, %c0_55, %c0_56] : memref<1x2x8x32xf32, #tpu.memory_space<vmem>>, vector<1x1x8x32xf32>
    %150 = vector.shape_cast %149 : vector<1x1x8x32xf32> to vector<8x32xf32>
    %151 = vector.shape_cast %148 : vector<8x32xf32> to vector<1x1x8x32xf32>
    tpu.vector_store %arg11[%c0_53, %c0_54, %c0_55, %c0_56], %151 {strides = array<i32>} : memref<1x2x8x32xf32, #tpu.memory_space<vmem>>, vector<1x1x8x32xf32>,
    %152 = tpu.concatenate %81, %103, %125, %147 in 1 : vector<8x8xf32>, vector<8x8xf32>, vector<8x8xf32>, vector<8x8xf32> -> vector<8x32xf32>
    %153 = arith.truncf %152 : vector<8x32xf32> to vector<8x32xbf16>
    %cst_57 = arith.constant dense<0.000000e+00> : vector<8x32xf32>
    %154 = tpu.matmul %153, %38, %cst_57 {dimension_numbers = #tpu.dot_dimension_numbers<[1], [0], [0], [1], [0, 0, 1, 1], [], []>} : vector<8x32xbf16>, vector<32x32xbf16>, vector<8x32xf32> -> vector<8x32xf32>
    %155 = vector.broadcast %46 : vector<1x32xf32> to vector<8x32xf32>
    %156 = arith.addf %154, %155 : vector<8x32xf32>
    %157 = arith.addf %156, %31 : vector<8x32xf32>
    %cst_58 = arith.constant dense<0.000000e+00> : vector<8xf32>
    %158 = vector.multi_reduction <add>, %157, %cst_58 [1] : vector<8x32xf32> to vector<8xf32>
    %159 = vector.shape_cast %158 : vector<8xf32> to vector<8x1xf32>
    %cst_59 = arith.constant 3.200000e+01 : f32
    %160 = vector.broadcast %cst_59 : f32 to vector<8x1xf32>
    %161 = arith.divf %159, %160 : vector<8x1xf32>
    %162 = vector.broadcast %161 : vector<8x1xf32> to vector<8x32xf32>
    %163 = arith.subf %157, %162 : vector<8x32xf32>
    %164 = arith.mulf %163, %163 : vector<8x32xf32>
    %cst_60 = arith.constant dense<0.000000e+00> : vector<8xf32>
    %165 = vector.multi_reduction <add>, %164, %cst_60 [1] : vector<8x32xf32> to vector<8xf32>
    %166 = vector.shape_cast %165 : vector<8xf32> to vector<8x1xf32>
    %cst_61 = arith.constant 3.200000e+01 : f32
    %167 = vector.broadcast %cst_61 : f32 to vector<8x1xf32>
    %168 = arith.divf %166, %167 : vector<8x1xf32>
    %cst_62 = arith.constant 9.99999996E-13 : f32
    %169 = vector.broadcast %cst_62 : f32 to vector<8x1xf32>
    %170 = arith.addf %168, %169 : vector<8x1xf32>
    %171 = math.rsqrt %170 : vector<8x1xf32>
    %172 = vector.broadcast %171 : vector<8x1xf32> to vector<8x32xf32>
    %173 = arith.mulf %163, %172 : vector<8x32xf32>
    %174 = vector.broadcast %47 : vector<1x32xf32> to vector<8x32xf32>
    %175 = arith.mulf %173, %174 : vector<8x32xf32>
    %176 = vector.broadcast %48 : vector<1x32xf32> to vector<8x32xf32>
    %177 = arith.addf %175, %176 : vector<8x32xf32>
    %178 = arith.truncf %177 : vector<8x32xf32> to vector<8x32xbf16>
    %cst_63 = arith.constant dense<0.000000e+00> : vector<8x64xf32>
    %179 = tpu.matmul %178, %40, %cst_63 {dimension_numbers = #tpu.dot_dimension_numbers<[1], [0], [0], [1], [0, 0, 1, 1], [], []>} : vector<8x32xbf16>, vector<32x64xbf16>, vector<8x64xf32> -> vector<8x64xf32>
    %180 = vector.broadcast %50 : vector<1x64xf32> to vector<8x64xf32>
    %181 = arith.addf %179, %180 : vector<8x64xf32>
    %182 = arith.mulf %181, %181 : vector<8x64xf32>
    %183 = arith.mulf %181, %182 : vector<8x64xf32>
    %cst_64 = arith.constant 4.471500e-02 : f32
    %184 = vector.broadcast %cst_64 : f32 to vector<8x64xf32>
    %185 = arith.mulf %184, %183 : vector<8x64xf32>
    %186 = arith.addf %181, %185 : vector<8x64xf32>
    %cst_65 = arith.constant 0.797884583 : f32
    %187 = vector.broadcast %cst_65 : f32 to vector<8x64xf32>
    %188 = arith.mulf %187, %186 : vector<8x64xf32>
    %189 = math.tanh %188 : vector<8x64xf32>
    %cst_66 = arith.constant 1.000000e+00 : f32
    %190 = vector.broadcast %cst_66 : f32 to vector<8x64xf32>
    %191 = arith.addf %190, %189 : vector<8x64xf32>
    %cst_67 = arith.constant 5.000000e-01 : f32
    %192 = vector.broadcast %cst_67 : f32 to vector<8x64xf32>
    %193 = arith.mulf %192, %191 : vector<8x64xf32>
    %194 = arith.mulf %181, %193 : vector<8x64xf32>
    %195 = arith.truncf %194 : vector<8x64xf32> to vector<8x64xbf16>
    %cst_68 = arith.constant dense<0.000000e+00> : vector<8x32xf32>
    %196 = tpu.matmul %195, %42, %cst_68 {dimension_numbers = #tpu.dot_dimension_numbers<[1], [0], [0], [1], [0, 0, 1, 1], [], []>} : vector<8x64xbf16>, vector<64x32xbf16>, vector<8x32xf32> -> vector<8x32xf32>
    %197 = vector.broadcast %49 : vector<1x32xf32> to vector<8x32xf32>
    %198 = arith.addf %196, %197 : vector<8x32xf32>
    %199 = arith.addf %198, %177 : vector<8x32xf32>
    %cst_69 = arith.constant dense<0.000000e+00> : vector<8xf32>
    %200 = vector.multi_reduction <add>, %199, %cst_69 [1] : vector<8x32xf32> to vector<8xf32>
    %201 = vector.shape_cast %200 : vector<8xf32> to vector<8x1xf32>
    %cst_70 = arith.constant 3.200000e+01 : f32
    %202 = vector.broadcast %cst_70 : f32 to vector<8x1xf32>
    %203 = arith.divf %201, %202 : vector<8x1xf32>
    %204 = vector.broadcast %203 : vector<8x1xf32> to vector<8x32xf32>
    %205 = arith.subf %199, %204 : vector<8x32xf32>
    %206 = arith.mulf %205, %205 : vector<8x32xf32>
    %cst_71 = arith.constant dense<0.000000e+00> : vector<8xf32>
    %207 = vector.multi_reduction <add>, %206, %cst_71 [1] : vector<8x32xf32> to vector<8xf32>
    %208 = vector.shape_cast %207 : vector<8xf32> to vector<8x1xf32>
    %cst_72 = arith.constant 3.200000e+01 : f32
    %209 = vector.broadcast %cst_72 : f32 to vector<8x1xf32>
    %210 = arith.divf %208, %209 : vector<8x1xf32>
    %cst_73 = arith.constant 9.99999996E-13 : f32
    %211 = vector.broadcast %cst_73 : f32 to vector<8x1xf32>
    %212 = arith.addf %210, %211 : vector<8x1xf32>
    %213 = math.rsqrt %212 : vector<8x1xf32>
    %214 = vector.broadcast %213 : vector<8x1xf32> to vector<8x32xf32>
    %215 = arith.mulf %205, %214 : vector<8x32xf32>
    %216 = vector.broadcast %51 : vector<1x32xf32> to vector<8x32xf32>
    %217 = arith.mulf %215, %216 : vector<8x32xf32>
    %218 = vector.broadcast %52 : vector<1x32xf32> to vector<8x32xf32>
    %219 = arith.addf %217, %218 : vector<8x32xf32>
    %c0_74 = arith.constant 0 : index
    %c1 = arith.constant 1 : index
    %c0_75 = arith.constant 0 : index
    %c0_76 = arith.constant 0 : index
    %220 = vector.load %arg10[%c0_74, %c1, %c0_75, %c0_76] : memref<1x3x8x32xf32, #tpu.memory_space<vmem>>, vector<1x1x8x32xf32>
    %221 = vector.shape_cast %220 : vector<1x1x8x32xf32> to vector<8x32xf32>
    %222 = vector.shape_cast %219 : vector<8x32xf32> to vector<1x1x8x32xf32>
    tpu.vector_store %arg10[%c0_74, %c1, %c0_75, %c0_76], %222 {strides = array<i32>} : memref<1x3x8x32xf32, #tpu.memory_space<vmem>>, vector<1x1x8x32xf32>,
    %c1_77 = arith.constant 1 : index
    %c0_78 = arith.constant 0 : index
    %c0_79 = arith.constant 0 : index
    %223 = vector.load %arg5[%c1_77, %c0_78, %c0_79] : memref<2x32x96xbf16, #tpu.memory_space<vmem>>, vector<1x32x96xbf16>
    %224 = vector.shape_cast %223 : vector<1x32x96xbf16> to vector<32x96xbf16>
    %c1_80 = arith.constant 1 : index
    %c0_81 = arith.constant 0 : index
    %c0_82 = arith.constant 0 : index
    %225 = vector.load %arg6[%c1_80, %c0_81, %c0_82] : memref<2x32x32xbf16, #tpu.memory_space<vmem>>, vector<1x32x32xbf16>
    %226 = vector.shape_cast %225 : vector<1x32x32xbf16> to vector<32x32xbf16>
    %c1_83 = arith.constant 1 : index
    %c0_84 = arith.constant 0 : index
    %c0_85 = arith.constant 0 : index
    %227 = vector.load %arg7[%c1_83, %c0_84, %c0_85] : memref<2x32x64xbf16, #tpu.memory_space<vmem>>, vector<1x32x64xbf16>
    %228 = vector.shape_cast %227 : vector<1x32x64xbf16> to vector<32x64xbf16>
    %c1_86 = arith.constant 1 : index
    %c0_87 = arith.constant 0 : index
    %c0_88 = arith.constant 0 : index
    %229 = vector.load %arg8[%c1_86, %c0_87, %c0_88] : memref<2x64x32xbf16, #tpu.memory_space<vmem>>, vector<1x64x32xbf16>
    %230 = vector.shape_cast %229 : vector<1x64x32xbf16> to vector<64x32xbf16>
    %c1_89 = arith.constant 1 : index
    %c0_90 = arith.constant 0 : index
    %c0_91 = arith.constant 0 : index
    %231 = vector.load %arg9[%c1_89, %c0_90, %c0_91] : memref<2x3x128xf32, #tpu.memory_space<vmem>>, vector<1x3x128xf32>
    %232 = vector.shape_cast %231 : vector<1x3x128xf32> to vector<3x128xf32>
    %233 = vector.extract_strided_slice %232 {offsets = [0, 0], sizes = [1, 96], strides = [1, 1]} : vector<3x128xf32> to vector<1x96xf32>
    %234 = vector.extract_strided_slice %232 {offsets = [1, 0], sizes = [1, 32], strides = [1, 1]} : vector<3x128xf32> to vector<1x32xf32>
    %235 = vector.extract_strided_slice %232 {offsets = [1, 32], sizes = [1, 32], strides = [1, 1]} : vector<3x128xf32> to vector<1x32xf32>
    %236 = vector.extract_strided_slice %232 {offsets = [1, 64], sizes = [1, 32], strides = [1, 1]} : vector<3x128xf32> to vector<1x32xf32>
    %237 = vector.extract_strided_slice %232 {offsets = [1, 96], sizes = [1, 32], strides = [1, 1]} : vector<3x128xf32> to vector<1x32xf32>
    %238 = vector.extract_strided_slice %232 {offsets = [2, 0], sizes = [1, 64], strides = [1, 1]} : vector<3x128xf32> to vector<1x64xf32>
    %239 = vector.extract_strided_slice %232 {offsets = [2, 64], sizes = [1, 32], strides = [1, 1]} : vector<3x128xf32> to vector<1x32xf32>
    %240 = vector.extract_strided_slice %232 {offsets = [2, 96], sizes = [1, 32], strides = [1, 1]} : vector<3x128xf32> to vector<1x32xf32>
    %241 = arith.truncf %219 : vector<8x32xf32> to vector<8x32xbf16>
    %cst_92 = arith.constant dense<0.000000e+00> : vector<8x96xf32>
    %242 = tpu.matmul %241, %224, %cst_92 {dimension_numbers = #tpu.dot_dimension_numbers<[1], [0], [0], [1], [0, 0, 1, 1], [], []>} : vector<8x32xbf16>, vector<32x96xbf16>, vector<8x96xf32> -> vector<8x96xf32>
    %243 = vector.broadcast %233 : vector<1x96xf32> to vector<8x96xf32>
    %244 = arith.addf %242, %243 : vector<8x96xf32>
    %245 = vector.extract_strided_slice %244 {offsets = [0, 0], sizes = [8, 32], strides = [1, 1]} : vector<8x96xf32> to vector<8x32xf32>
    %246 = vector.extract_strided_slice %244 {offsets = [0, 32], sizes = [8, 32], strides = [1, 1]} : vector<8x96xf32> to vector<8x32xf32>
    %247 = vector.extract_strided_slice %244 {offsets = [0, 64], sizes = [8, 32], strides = [1, 1]} : vector<8x96xf32> to vector<8x32xf32>
    %248 = vector.extract_strided_slice %245 {offsets = [0, 0], sizes = [8, 8], strides = [1, 1]} : vector<8x32xf32> to vector<8x8xf32>
    %249 = vector.extract_strided_slice %246 {offsets = [0, 0], sizes = [8, 8], strides = [1, 1]} : vector<8x32xf32> to vector<8x8xf32>
    %250 = vector.extract_strided_slice %247 {offsets = [0, 0], sizes = [8, 8], strides = [1, 1]} : vector<8x32xf32> to vector<8x8xf32>
    %251 = arith.truncf %248 : vector<8x8xf32> to vector<8x8xbf16>
    %252 = arith.truncf %249 : vector<8x8xf32> to vector<8x8xbf16>
    %cst_93 = arith.constant dense<0.000000e+00> : vector<8x8xf32>
    %253 = tpu.matmul %251, %252, %cst_93 {dimension_numbers = #tpu.dot_dimension_numbers<[1], [1], [0], [0], [0, 0, 1, 0], [], []>} : vector<8x8xbf16>, vector<8x8xbf16>, vector<8x8xf32> -> vector<8x8xf32>
    %cst_94 = arith.constant 0.353553385 : f32
    %254 = vector.broadcast %cst_94 : f32 to vector<8x8xf32>
    %255 = arith.mulf %253, %254 : vector<8x8xf32>
    %256 = vector.broadcast %7 : vector<1x8xf32> to vector<8x8xf32>
    %257 = arith.addf %255, %256 : vector<8x8xf32>
    %cst_95 = arith.constant dense<0xFF800000> : vector<8xf32>
    %258 = vector.multi_reduction <maximumf>, %257, %cst_95 [1] : vector<8x8xf32> to vector<8xf32>
    %259 = vector.shape_cast %258 : vector<8xf32> to vector<8x1xf32>
    %260 = vector.broadcast %259 : vector<8x1xf32> to vector<8x8xf32>
    %261 = arith.subf %257, %260 : vector<8x8xf32>
    %262 = math.exp %261 : vector<8x8xf32>
    %cst_96 = arith.constant dense<0.000000e+00> : vector<8xf32>
    %263 = vector.multi_reduction <add>, %262, %cst_96 [1] : vector<8x8xf32> to vector<8xf32>
    %264 = vector.shape_cast %263 : vector<8xf32> to vector<8x1xf32>
    %265 = vector.broadcast %264 : vector<8x1xf32> to vector<8x8xf32>
    %266 = arith.divf %262, %265 : vector<8x8xf32>
    %267 = arith.truncf %266 : vector<8x8xf32> to vector<8x8xbf16>
    %268 = arith.truncf %250 : vector<8x8xf32> to vector<8x8xbf16>
    %cst_97 = arith.constant dense<0.000000e+00> : vector<8x8xf32>
    %269 = tpu.matmul %267, %268, %cst_97 {dimension_numbers = #tpu.dot_dimension_numbers<[1], [0], [0], [1], [0, 0, 1, 1], [], []>} : vector<8x8xbf16>, vector<8x8xbf16>, vector<8x8xf32> -> vector<8x8xf32>
    %270 = vector.extract_strided_slice %245 {offsets = [0, 8], sizes = [8, 8], strides = [1, 1]} : vector<8x32xf32> to vector<8x8xf32>
    %271 = vector.extract_strided_slice %246 {offsets = [0, 8], sizes = [8, 8], strides = [1, 1]} : vector<8x32xf32> to vector<8x8xf32>
    %272 = vector.extract_strided_slice %247 {offsets = [0, 8], sizes = [8, 8], strides = [1, 1]} : vector<8x32xf32> to vector<8x8xf32>
    %273 = arith.truncf %270 : vector<8x8xf32> to vector<8x8xbf16>
    %274 = arith.truncf %271 : vector<8x8xf32> to vector<8x8xbf16>
    %cst_98 = arith.constant dense<0.000000e+00> : vector<8x8xf32>
    %275 = tpu.matmul %273, %274, %cst_98 {dimension_numbers = #tpu.dot_dimension_numbers<[1], [1], [0], [0], [0, 0, 1, 0], [], []>} : vector<8x8xbf16>, vector<8x8xbf16>, vector<8x8xf32> -> vector<8x8xf32>
    %cst_99 = arith.constant 0.353553385 : f32
    %276 = vector.broadcast %cst_99 : f32 to vector<8x8xf32>
    %277 = arith.mulf %275, %276 : vector<8x8xf32>
    %278 = vector.broadcast %7 : vector<1x8xf32> to vector<8x8xf32>
    %279 = arith.addf %277, %278 : vector<8x8xf32>
    %cst_100 = arith.constant dense<0xFF800000> : vector<8xf32>
    %280 = vector.multi_reduction <maximumf>, %279, %cst_100 [1] : vector<8x8xf32> to vector<8xf32>
    %281 = vector.shape_cast %280 : vector<8xf32> to vector<8x1xf32>
    %282 = vector.broadcast %281 : vector<8x1xf32> to vector<8x8xf32>
    %283 = arith.subf %279, %282 : vector<8x8xf32>
    %284 = math.exp %283 : vector<8x8xf32>
    %cst_101 = arith.constant dense<0.000000e+00> : vector<8xf32>
    %285 = vector.multi_reduction <add>, %284, %cst_101 [1] : vector<8x8xf32> to vector<8xf32>
    %286 = vector.shape_cast %285 : vector<8xf32> to vector<8x1xf32>
    %287 = vector.broadcast %286 : vector<8x1xf32> to vector<8x8xf32>
    %288 = arith.divf %284, %287 : vector<8x8xf32>
    %289 = arith.truncf %288 : vector<8x8xf32> to vector<8x8xbf16>
    %290 = arith.truncf %272 : vector<8x8xf32> to vector<8x8xbf16>
    %cst_102 = arith.constant dense<0.000000e+00> : vector<8x8xf32>
    %291 = tpu.matmul %289, %290, %cst_102 {dimension_numbers = #tpu.dot_dimension_numbers<[1], [0], [0], [1], [0, 0, 1, 1], [], []>} : vector<8x8xbf16>, vector<8x8xbf16>, vector<8x8xf32> -> vector<8x8xf32>
    %292 = vector.extract_strided_slice %245 {offsets = [0, 16], sizes = [8, 8], strides = [1, 1]} : vector<8x32xf32> to vector<8x8xf32>
    %293 = vector.extract_strided_slice %246 {offsets = [0, 16], sizes = [8, 8], strides = [1, 1]} : vector<8x32xf32> to vector<8x8xf32>
    %294 = vector.extract_strided_slice %247 {offsets = [0, 16], sizes = [8, 8], strides = [1, 1]} : vector<8x32xf32> to vector<8x8xf32>
    %295 = arith.truncf %292 : vector<8x8xf32> to vector<8x8xbf16>
    %296 = arith.truncf %293 : vector<8x8xf32> to vector<8x8xbf16>
    %cst_103 = arith.constant dense<0.000000e+00> : vector<8x8xf32>
    %297 = tpu.matmul %295, %296, %cst_103 {dimension_numbers = #tpu.dot_dimension_numbers<[1], [1], [0], [0], [0, 0, 1, 0], [], []>} : vector<8x8xbf16>, vector<8x8xbf16>, vector<8x8xf32> -> vector<8x8xf32>
    %cst_104 = arith.constant 0.353553385 : f32
    %298 = vector.broadcast %cst_104 : f32 to vector<8x8xf32>
    %299 = arith.mulf %297, %298 : vector<8x8xf32>
    %300 = vector.broadcast %7 : vector<1x8xf32> to vector<8x8xf32>
    %301 = arith.addf %299, %300 : vector<8x8xf32>
    %cst_105 = arith.constant dense<0xFF800000> : vector<8xf32>
    %302 = vector.multi_reduction <maximumf>, %301, %cst_105 [1] : vector<8x8xf32> to vector<8xf32>
    %303 = vector.shape_cast %302 : vector<8xf32> to vector<8x1xf32>
    %304 = vector.broadcast %303 : vector<8x1xf32> to vector<8x8xf32>
    %305 = arith.subf %301, %304 : vector<8x8xf32>
    %306 = math.exp %305 : vector<8x8xf32>
    %cst_106 = arith.constant dense<0.000000e+00> : vector<8xf32>
    %307 = vector.multi_reduction <add>, %306, %cst_106 [1] : vector<8x8xf32> to vector<8xf32>
    %308 = vector.shape_cast %307 : vector<8xf32> to vector<8x1xf32>
    %309 = vector.broadcast %308 : vector<8x1xf32> to vector<8x8xf32>
    %310 = arith.divf %306, %309 : vector<8x8xf32>
    %311 = arith.truncf %310 : vector<8x8xf32> to vector<8x8xbf16>
    %312 = arith.truncf %294 : vector<8x8xf32> to vector<8x8xbf16>
    %cst_107 = arith.constant dense<0.000000e+00> : vector<8x8xf32>
    %313 = tpu.matmul %311, %312, %cst_107 {dimension_numbers = #tpu.dot_dimension_numbers<[1], [0], [0], [1], [0, 0, 1, 1], [], []>} : vector<8x8xbf16>, vector<8x8xbf16>, vector<8x8xf32> -> vector<8x8xf32>
    %314 = vector.extract_strided_slice %245 {offsets = [0, 24], sizes = [8, 8], strides = [1, 1]} : vector<8x32xf32> to vector<8x8xf32>
    %315 = vector.extract_strided_slice %246 {offsets = [0, 24], sizes = [8, 8], strides = [1, 1]} : vector<8x32xf32> to vector<8x8xf32>
    %316 = vector.extract_strided_slice %247 {offsets = [0, 24], sizes = [8, 8], strides = [1, 1]} : vector<8x32xf32> to vector<8x8xf32>
    %317 = arith.truncf %314 : vector<8x8xf32> to vector<8x8xbf16>
    %318 = arith.truncf %315 : vector<8x8xf32> to vector<8x8xbf16>
    %cst_108 = arith.constant dense<0.000000e+00> : vector<8x8xf32>
    %319 = tpu.matmul %317, %318, %cst_108 {dimension_numbers = #tpu.dot_dimension_numbers<[1], [1], [0], [0], [0, 0, 1, 0], [], []>} : vector<8x8xbf16>, vector<8x8xbf16>, vector<8x8xf32> -> vector<8x8xf32>
    %cst_109 = arith.constant 0.353553385 : f32
    %320 = vector.broadcast %cst_109 : f32 to vector<8x8xf32>
    %321 = arith.mulf %319, %320 : vector<8x8xf32>
    %322 = vector.broadcast %7 : vector<1x8xf32> to vector<8x8xf32>
    %323 = arith.addf %321, %322 : vector<8x8xf32>
    %cst_110 = arith.constant dense<0xFF800000> : vector<8xf32>
    %324 = vector.multi_reduction <maximumf>, %323, %cst_110 [1] : vector<8x8xf32> to vector<8xf32>
    %325 = vector.shape_cast %324 : vector<8xf32> to vector<8x1xf32>
    %326 = vector.broadcast %325 : vector<8x1xf32> to vector<8x8xf32>
    %327 = arith.subf %323, %326 : vector<8x8xf32>
    %328 = math.exp %327 : vector<8x8xf32>
    %cst_111 = arith.constant dense<0.000000e+00> : vector<8xf32>
    %329 = vector.multi_reduction <add>, %328, %cst_111 [1] : vector<8x8xf32> to vector<8xf32>
    %330 = vector.shape_cast %329 : vector<8xf32> to vector<8x1xf32>
    %331 = vector.broadcast %330 : vector<8x1xf32> to vector<8x8xf32>
    %332 = arith.divf %328, %331 : vector<8x8xf32>
    %333 = arith.truncf %332 : vector<8x8xf32> to vector<8x8xbf16>
    %334 = arith.truncf %316 : vector<8x8xf32> to vector<8x8xbf16>
    %cst_112 = arith.constant dense<0.000000e+00> : vector<8x8xf32>
    %335 = tpu.matmul %333, %334, %cst_112 {dimension_numbers = #tpu.dot_dimension_numbers<[1], [0], [0], [1], [0, 0, 1, 1], [], []>} : vector<8x8xbf16>, vector<8x8xbf16>, vector<8x8xf32> -> vector<8x8xf32>
    %336 = tpu.concatenate %266, %288, %310, %332 in 1 : vector<8x8xf32>, vector<8x8xf32>, vector<8x8xf32>, vector<8x8xf32> -> vector<8x32xf32>
    %c0_113 = arith.constant 0 : index
    %c1_114 = arith.constant 1 : index
    %c0_115 = arith.constant 0 : index
    %c0_116 = arith.constant 0 : index
    %337 = vector.load %arg11[%c0_113, %c1_114, %c0_115, %c0_116] : memref<1x2x8x32xf32, #tpu.memory_space<vmem>>, vector<1x1x8x32xf32>
    %338 = vector.shape_cast %337 : vector<1x1x8x32xf32> to vector<8x32xf32>
    %339 = vector.shape_cast %336 : vector<8x32xf32> to vector<1x1x8x32xf32>
    tpu.vector_store %arg11[%c0_113, %c1_114, %c0_115, %c0_116], %339 {strides = array<i32>} : memref<1x2x8x32xf32, #tpu.memory_space<vmem>>, vector<1x1x8x32xf32>,
    %340 = tpu.concatenate %269, %291, %313, %335 in 1 : vector<8x8xf32>, vector<8x8xf32>, vector<8x8xf32>, vector<8x8xf32> -> vector<8x32xf32>
    %341 = arith.truncf %340 : vector<8x32xf32> to vector<8x32xbf16>
    %cst_117 = arith.constant dense<0.000000e+00> : vector<8x32xf32>
    %342 = tpu.matmul %341, %226, %cst_117 {dimension_numbers = #tpu.dot_dimension_numbers<[1], [0], [0], [1], [0, 0, 1, 1], [], []>} : vector<8x32xbf16>, vector<32x32xbf16>, vector<8x32xf32> -> vector<8x32xf32>
    %343 = vector.broadcast %234 : vector<1x32xf32> to vector<8x32xf32>
    %344 = arith.addf %342, %343 : vector<8x32xf32>
    %345 = arith.addf %344, %219 : vector<8x32xf32>
    %cst_118 = arith.constant dense<0.000000e+00> : vector<8xf32>
    %346 = vector.multi_reduction <add>, %345, %cst_118 [1] : vector<8x32xf32> to vector<8xf32>
    %347 = vector.shape_cast %346 : vector<8xf32> to vector<8x1xf32>
    %cst_119 = arith.constant 3.200000e+01 : f32
    %348 = vector.broadcast %cst_119 : f32 to vector<8x1xf32>
    %349 = arith.divf %347, %348 : vector<8x1xf32>
    %350 = vector.broadcast %349 : vector<8x1xf32> to vector<8x32xf32>
    %351 = arith.subf %345, %350 : vector<8x32xf32>
    %352 = arith.mulf %351, %351 : vector<8x32xf32>
    %cst_120 = arith.constant dense<0.000000e+00> : vector<8xf32>
    %353 = vector.multi_reduction <add>, %352, %cst_120 [1] : vector<8x32xf32> to vector<8xf32>
    %354 = vector.shape_cast %353 : vector<8xf32> to vector<8x1xf32>
    %cst_121 = arith.constant 3.200000e+01 : f32
    %355 = vector.broadcast %cst_121 : f32 to vector<8x1xf32>
    %356 = arith.divf %354, %355 : vector<8x1xf32>
    %cst_122 = arith.constant 9.99999996E-13 : f32
    %357 = vector.broadcast %cst_122 : f32 to vector<8x1xf32>
    %358 = arith.addf %356, %357 : vector<8x1xf32>
    %359 = math.rsqrt %358 : vector<8x1xf32>
    %360 = vector.broadcast %359 : vector<8x1xf32> to vector<8x32xf32>
    %361 = arith.mulf %351, %360 : vector<8x32xf32>
    %362 = vector.broadcast %235 : vector<1x32xf32> to vector<8x32xf32>
    %363 = arith.mulf %361, %362 : vector<8x32xf32>
    %364 = vector.broadcast %236 : vector<1x32xf32> to vector<8x32xf32>
    %365 = arith.addf %363, %364 : vector<8x32xf32>
    %366 = arith.truncf %365 : vector<8x32xf32> to vector<8x32xbf16>
    %cst_123 = arith.constant dense<0.000000e+00> : vector<8x64xf32>
    %367 = tpu.matmul %366, %228, %cst_123 {dimension_numbers = #tpu.dot_dimension_numbers<[1], [0], [0], [1], [0, 0, 1, 1], [], []>} : vector<8x32xbf16>, vector<32x64xbf16>, vector<8x64xf32> -> vector<8x64xf32>
    %368 = vector.broadcast %238 : vector<1x64xf32> to vector<8x64xf32>
    %369 = arith.addf %367, %368 : vector<8x64xf32>
    %370 = arith.mulf %369, %369 : vector<8x64xf32>
    %371 = arith.mulf %369, %370 : vector<8x64xf32>
    %cst_124 = arith.constant 4.471500e-02 : f32
    %372 = vector.broadcast %cst_124 : f32 to vector<8x64xf32>
    %373 = arith.mulf %372, %371 : vector<8x64xf32>
    %374 = arith.addf %369, %373 : vector<8x64xf32>
    %cst_125 = arith.constant 0.797884583 : f32
    %375 = vector.broadcast %cst_125 : f32 to vector<8x64xf32>
    %376 = arith.mulf %375, %374 : vector<8x64xf32>
    %377 = math.tanh %376 : vector<8x64xf32>
    %cst_126 = arith.constant 1.000000e+00 : f32
    %378 = vector.broadcast %cst_126 : f32 to vector<8x64xf32>
    %379 = arith.addf %378, %377 : vector<8x64xf32>
    %cst_127 = arith.constant 5.000000e-01 : f32
    %380 = vector.broadcast %cst_127 : f32 to vector<8x64xf32>
    %381 = arith.mulf %380, %379 : vector<8x64xf32>
    %382 = arith.mulf %369, %381 : vector<8x64xf32>
    %383 = arith.truncf %382 : vector<8x64xf32> to vector<8x64xbf16>
    %cst_128 = arith.constant dense<0.000000e+00> : vector<8x32xf32>
    %384 = tpu.matmul %383, %230, %cst_128 {dimension_numbers = #tpu.dot_dimension_numbers<[1], [0], [0], [1], [0, 0, 1, 1], [], []>} : vector<8x64xbf16>, vector<64x32xbf16>, vector<8x32xf32> -> vector<8x32xf32>
    %385 = vector.broadcast %237 : vector<1x32xf32> to vector<8x32xf32>
    %386 = arith.addf %384, %385 : vector<8x32xf32>
    %387 = arith.addf %386, %365 : vector<8x32xf32>
    %cst_129 = arith.constant dense<0.000000e+00> : vector<8xf32>
    %388 = vector.multi_reduction <add>, %387, %cst_129 [1] : vector<8x32xf32> to vector<8xf32>
    %389 = vector.shape_cast %388 : vector<8xf32> to vector<8x1xf32>
    %cst_130 = arith.constant 3.200000e+01 : f32
    %390 = vector.broadcast %cst_130 : f32 to vector<8x1xf32>
    %391 = arith.divf %389, %390 : vector<8x1xf32>
    %392 = vector.broadcast %391 : vector<8x1xf32> to vector<8x32xf32>
    %393 = arith.subf %387, %392 : vector<8x32xf32>
    %394 = arith.mulf %393, %393 : vector<8x32xf32>
    %cst_131 = arith.constant dense<0.000000e+00> : vector<8xf32>
    %395 = vector.multi_reduction <add>, %394, %cst_131 [1] : vector<8x32xf32> to vector<8xf32>
    %396 = vector.shape_cast %395 : vector<8xf32> to vector<8x1xf32>
    %cst_132 = arith.constant 3.200000e+01 : f32
    %397 = vector.broadcast %cst_132 : f32 to vector<8x1xf32>
    %398 = arith.divf %396, %397 : vector<8x1xf32>
    %cst_133 = arith.constant 9.99999996E-13 : f32
    %399 = vector.broadcast %cst_133 : f32 to vector<8x1xf32>
    %400 = arith.addf %398, %399 : vector<8x1xf32>
    %401 = math.rsqrt %400 : vector<8x1xf32>
    %402 = vector.broadcast %401 : vector<8x1xf32> to vector<8x32xf32>
    %403 = arith.mulf %393, %402 : vector<8x32xf32>
    %404 = vector.broadcast %239 : vector<1x32xf32> to vector<8x32xf32>
    %405 = arith.mulf %403, %404 : vector<8x32xf32>
    %406 = vector.broadcast %240 : vector<1x32xf32> to vector<8x32xf32>
    %407 = arith.addf %405, %406 : vector<8x32xf32>
    %c0_134 = arith.constant 0 : index
    %c2 = arith.constant 2 : index
    %c0_135 = arith.constant 0 : index
    %c0_136 = arith.constant 0 : index
    %408 = vector.load %arg10[%c0_134, %c2, %c0_135, %c0_136] : memref<1x3x8x32xf32, #tpu.memory_space<vmem>>, vector<1x1x8x32xf32>
    %409 = vector.shape_cast %408 : vector<1x1x8x32xf32> to vector<8x32xf32>
    %410 = vector.shape_cast %407 : vector<8x32xf32> to vector<1x1x8x32xf32>
    tpu.vector_store %arg10[%c0_134, %c2, %c0_135, %c0_136], %410 {strides = array<i32>} : memref<1x3x8x32xf32, #tpu.memory_space<vmem>>, vector<1x1x8x32xf32>,
    %411 = vector.extract_strided_slice %407 {offsets = [0, 0], sizes = [1, 32], strides = [1, 1]} : vector<8x32xf32> to vector<1x32xf32>
    %c0_137 = arith.constant 0 : index
    %c0_138 = arith.constant 0 : index
    %412 = vector.load %arg4[%c0_137, %c0_138] : memref<32x5xf32, #tpu.memory_space<vmem>>, vector<32x5xf32>
    %413 = arith.truncf %411 : vector<1x32xf32> to vector<1x32xbf16>
    %414 = arith.truncf %412 : vector<32x5xf32> to vector<32x5xbf16>
    %cst_139 = arith.constant dense<0.000000e+00> : vector<1x5xf32>
    %415 = tpu.matmul %413, %414, %cst_139 {dimension_numbers = #tpu.dot_dimension_numbers<[1], [0], [0], [1], [0, 0, 1, 1], [], []>} : vector<1x32xbf16>, vector<32x5xbf16>, vector<1x5xf32> -> vector<1x5xf32>
    %416 = arith.addf %415, %11 : vector<1x5xf32>
    %c0_140 = arith.constant 0 : index
    %c0_141 = arith.constant 0 : index
    %c0_142 = arith.constant 0 : index
    %417 = vector.load %arg12[%c0_140, %c0_141, %c0_142] : memref<1x1x5xf32, #tpu.memory_space<vmem>>, vector<1x1x5xf32>
    %418 = vector.shape_cast %417 : vector<1x1x5xf32> to vector<1x5xf32>
    %419 = vector.shape_cast %416 : vector<1x5xf32> to vector<1x1x5xf32>
    tpu.vector_store %arg12[%c0_140, %c0_141, %c0_142], %419 {strides = array<i32>} : memref<1x1x5xf32, #tpu.memory_space<vmem>>, vector<1x1x5xf32>,
    return
  }
  func.func @transform_0(%arg0: i32) -> (i32, i32, i32) {
    %c0_i32 = arith.constant 0 : i32
    %c0_i32_0 = arith.constant 0 : i32
    %c0_i32_1 = arith.constant 0 : i32
    return %arg0, %c0_i32, %c0_i32_0 : i32, i32, i32
  }
  func.func @transform_1(%arg0: i32) -> (i32, i32, i32) {
    %c0_i32 = arith.constant 0 : i32
    %c0_i32_0 = arith.constant 0 : i32
    %c0_i32_1 = arith.constant 0 : i32
    return %arg0, %c0_i32, %c0_i32_0 : i32, i32, i32
  }
  func.func @transform_2(%arg0: i32) -> (i32, i32) {
    %c0_i32 = arith.constant 0 : i32
    %c0_i32_0 = arith.constant 0 : i32
    %c0_i32_1 = arith.constant 0 : i32
    return %c0_i32, %c0_i32_0 : i32, i32
  }
  func.func @transform_3(%arg0: i32) -> (i32, i32) {
    %c0_i32 = arith.constant 0 : i32
    %c0_i32_0 = arith.constant 0 : i32
    %c0_i32_1 = arith.constant 0 : i32
    return %c0_i32, %c0_i32_0 : i32, i32
  }
  func.func @transform_4(%arg0: i32) -> (i32, i32, i32) {
    %c0_i32 = arith.constant 0 : i32
    %c0_i32_0 = arith.constant 0 : i32
    %c0_i32_1 = arith.constant 0 : i32
    %c0_i32_2 = arith.constant 0 : i32
    return %c0_i32, %c0_i32_0, %c0_i32_1 : i32, i32, i32
  }
  func.func @transform_5(%arg0: i32) -> (i32, i32, i32) {
    %c0_i32 = arith.constant 0 : i32
    %c0_i32_0 = arith.constant 0 : i32
    %c0_i32_1 = arith.constant 0 : i32
    %c0_i32_2 = arith.constant 0 : i32
    return %c0_i32, %c0_i32_0, %c0_i32_1 : i32, i32, i32
  }
  func.func @transform_6(%arg0: i32) -> (i32, i32, i32) {
    %c0_i32 = arith.constant 0 : i32
    %c0_i32_0 = arith.constant 0 : i32
    %c0_i32_1 = arith.constant 0 : i32
    %c0_i32_2 = arith.constant 0 : i32
    return %c0_i32, %c0_i32_0, %c0_i32_1 : i32, i32, i32
  }
  func.func @transform_7(%arg0: i32) -> (i32, i32, i32) {
    %c0_i32 = arith.constant 0 : i32
    %c0_i32_0 = arith.constant 0 : i32
    %c0_i32_1 = arith.constant 0 : i32
    %c0_i32_2 = arith.constant 0 : i32
    return %c0_i32, %c0_i32_0, %c0_i32_1 : i32, i32, i32
  }
  func.func @transform_8(%arg0: i32) -> (i32, i32, i32) {
    %c0_i32 = arith.constant 0 : i32
    %c0_i32_0 = arith.constant 0 : i32
    %c0_i32_1 = arith.constant 0 : i32
    %c0_i32_2 = arith.constant 0 : i32
    return %c0_i32, %c0_i32_0, %c0_i32_1 : i32, i32, i32
  }
  func.func @transform_9(%arg0: i32) -> (i32, i32, i32, i32) {
    %c0_i32 = arith.constant 0 : i32
    %c0_i32_0 = arith.constant 0 : i32
    %c0_i32_1 = arith.constant 0 : i32
    %c0_i32_2 = arith.constant 0 : i32
    return %arg0, %c0_i32, %c0_i32_0, %c0_i32_1 : i32, i32, i32, i32
  }
  func.func @transform_10(%arg0: i32) -> (i32, i32, i32, i32) {
    %c0_i32 = arith.constant 0 : i32
    %c0_i32_0 = arith.constant 0 : i32
    %c0_i32_1 = arith.constant 0 : i32
    %c0_i32_2 = arith.constant 0 : i32
    return %arg0, %c0_i32, %c0_i32_0, %c0_i32_1 : i32, i32, i32, i32
  }
  func.func @transform_11(%arg0: i32) -> (i32, i32, i32) {
    %c0_i32 = arith.constant 0 : i32
    %c0_i32_0 = arith.constant 0 : i32
    %c0_i32_1 = arith.constant 0 : i32
    return %arg0, %c0_i32, %c0_i32_0 : i32, i32, i32
  }
}

</mosaic_0001>

<bundles_post_ra>
// kernel: squeeze.11
= control target key start
LH: loop header
LB: loop body
LE: loop exit
PB: predicated region body
PF: predicated region fallthrough
CT: control target
= control target key end

     0   :  { %vm3_vm0 = vcmask 64512   ;;  %s196_s10 = smov 120   ;;  %s197_s11 = smov 104   ;;  %s278_s0 = inlined_call_operand.vmem [shape: f32[2,1,8,32], index: 0, kind: input, shape index: {}]   ;;  %s279_s1 = inlined_call_operand.vmem [shape: f32[2,8,4,8], index: 1, kind: output, shape index: {}]  }
   0x1   :  { %v30_v0 = vld [vmem:[%s278_s0] sm:$0xff]   ;;  %v175_v1 = vld [vmem:[%s278_s0 + $0x8] sm:$0xff]   ;;  %s195_s0 = smov 112  }
   0x2   :  { %31 = vrot.lane.b32.xlu1 %v30_v0, %s195_s0  ;;  %14 = vrot.lane.b32.xlu0 %v30_v0, %s196_s10  ;;  %10 = vst.msk [vmem:[#allocation0 + $0x40] ss:$8 sm:$0xf] %vm3_vm0, %v175_v1   ;;  %12 = vst.msk [vmem:[#allocation0 + $0x40] ss:$8 sm:$0xf0] %vm3_vm0, %v175_v1  }
   0x3   :  { %4 = vst.msk [vmem:[#allocation0] ss:$8 sm:$0xf] %vm3_vm0, %v30_v0   ;;  %5 = vst.msk [vmem:[#allocation0] ss:$8 sm:$0xf0] %vm3_vm0, %v30_v0  }
   0x6   :  { %40 = vrot.lane.b32.xlu1 %v175_v1, %s195_s0  ;;  %23 = vrot.lane.b32.xlu0 %v175_v1, %s196_s10 }
   0xa   :  { %57 = vrot.lane.b32.xlu1 %v175_v1, %s197_s11  ;;  %48 = vrot.lane.b32.xlu0 %v30_v0, %s197_s11 }
  0x74   :  { %v32_v2 = vpop.permute.xlu1 %31   ;;  %v15_v3 = vpop.permute.xlu0 %14  }
  0x75   :  { %35 = vst.msk [vmem:[#allocation0 + $0x2] ss:$8 sm:$0xf] %vm3_vm0, %v32_v2   ;;  %37 = vst.msk [vmem:[#allocation0 + $0x2] ss:$8 sm:$0xf0] %vm3_vm0, %v32_v2  }
  0x76   :  { %18 = vst.msk [vmem:[#allocation0 + $0x1] ss:$8 sm:$0xf] %vm3_vm0, %v15_v3   ;;  %20 = vst.msk [vmem:[#allocation0 + $0x1] ss:$8 sm:$0xf0] %vm3_vm0, %v15_v3  }
  0x78   :  { %v41_v4 = vpop.permute.xlu1 %40   ;;  %v24_v5 = vpop.permute.xlu0 %23  }
  0x79   :  { %44 = vst.msk [vmem:[#allocation0 + $0x42] ss:$8 sm:$0xf] %vm3_vm0, %v41_v4   ;;  %46 = vst.msk [vmem:[#allocation0 + $0x42] ss:$8 sm:$0xf0] %vm3_vm0, %v41_v4  }
  0x7a   :  { %27 = vst.msk [vmem:[#allocation0 + $0x41] ss:$8 sm:$0xf] %vm3_vm0, %v24_v5   ;;  %29 = vst.msk [vmem:[#allocation0 + $0x41] ss:$8 sm:$0xf0] %vm3_vm0, %v24_v5  }
  0x7c   :  { %v58_v6 = vpop.permute.xlu1 %57   ;;  %v49_v7 = vpop.permute.xlu0 %48  }
  0x7d   :  { %61 = vst.msk [vmem:[#allocation0 + $0x43] ss:$8 sm:$0xf] %vm3_vm0, %v58_v6   ;;  %63 = vst.msk [vmem:[#allocation0 + $0x43] ss:$8 sm:$0xf0] %vm3_vm0, %v58_v6  }
  0x7e   :  { %52 = vst.msk [vmem:[#allocation0 + $0x3] ss:$8 sm:$0xf] %vm3_vm0, %v49_v7   ;;  %54 = vst.msk [vmem:[#allocation0 + $0x3] ss:$8 sm:$0xf0] %vm3_vm0, %v49_v7  }
  0x84   :  { %v112_v8 = vld [vmem:[#allocation0 + $0x40] sm:$0xf]  ;;  %v118_v9 = vld [vmem:[#allocation0 + $0x48] sm:$0xf]  ;;  %v124_v10 = vld [vmem:[#allocation0 + $0x50] sm:$0xf] }
  0x85   :  { %184 = vst [vmem:[%s279_s1 + $0x20] sm:$0xf] %v112_v8  ;;  %185 = vst [vmem:[%s279_s1 + $0x24] sm:$0xf] %v118_v9  ;;  %v130_v11 = vld [vmem:[#allocation0 + $0x58] sm:$0xf] }
  0x86   :  { %186 = vst [vmem:[%s279_s1 + $0x28] sm:$0xf] %v124_v10  ;;  %v136_v12 = vld [vmem:[#allocation0 + $0x60] sm:$0xf]  ;;  %v142_v13 = vld [vmem:[#allocation0 + $0x68] sm:$0xf] }
  0x87   :  { %187 = vst [vmem:[%s279_s1 + $0x2c] sm:$0xf] %v130_v11  ;;  %188 = vst [vmem:[%s279_s1 + $0x30] sm:$0xf] %v136_v12  ;;  %v148_v14 = vld [vmem:[#allocation0 + $0x70] sm:$0xf] }
  0x88   :  { %189 = vst [vmem:[%s279_s1 + $0x34] sm:$0xf] %v142_v13  ;;  %v154_v15 = vld [vmem:[#allocation0 + $0x78] sm:$0xf]  ;;  %v67_v16 = vld [vmem:[#allocation0] sm:$0xf] }
  0x89   :  { %190 = vst [vmem:[%s279_s1 + $0x38] sm:$0xf] %v148_v14  ;;  %191 = vst [vmem:[%s279_s1 + $0x3c] sm:$0xf] %v154_v15  ;;  %v71_v17 = vld [vmem:[#allocation0 + $0x8] sm:$0xf] }
  0x8a   :  { %69 = vst [vmem:[%s279_s1] sm:$0xf] %v67_v16  ;;  %v76_v18 = vld [vmem:[#allocation0 + $0x10] sm:$0xf]  ;;  %v82_v19 = vld [vmem:[#allocation0 + $0x18] sm:$0xf] }
  0x8b   :  { %177 = vst [vmem:[%s279_s1 + $0x4] sm:$0xf] %v71_v17  ;;  %178 = vst [vmem:[%s279_s1 + $0x8] sm:$0xf] %v76_v18  ;;  %v88_v20 = vld [vmem:[#allocation0 + $0x20] sm:$0xf] }
  0x8c   :  { %179 = vst [vmem:[%s279_s1 + $0xc] sm:$0xf] %v82_v19  ;;  %v94_v21 = vld [vmem:[#allocation0 + $0x28] sm:$0xf]  ;;  %v100_v22 = vld [vmem:[#allocation0 + $0x30] sm:$0xf] }
  0x8d   :  { %180 = vst [vmem:[%s279_s1 + $0x10] sm:$0xf] %v88_v20  ;;  %181 = vst [vmem:[%s279_s1 + $0x14] sm:$0xf] %v94_v21  ;;  %v106_v23 = vld [vmem:[#allocation0 + $0x38] sm:$0xf] }
  0x8e   :  { %182 = vst [vmem:[%s279_s1 + $0x18] sm:$0xf] %v100_v22  ;;  %183 = vst [vmem:[%s279_s1 + $0x1c] sm:$0xf] %v106_v23 }

// kernel: _bert_forward_impl.1
= control target key start
LH: loop header
LB: loop body
LE: loop exit
PB: predicated region body
PF: predicated region fallthrough
CT: control target
= control target key end

     0   :  { %s3411_s0 = inlined_call_operand.vmem [shape: f32[2,8,32], index: 0, kind: input, shape index: {}]   ;;  %s3412_s1 = inlined_call_operand.vmem [shape: f32[2,1,8], index: 1, kind: input, shape index: {}]   ;;  %s3413_s2 = inlined_call_operand.vmem [shape: f32[1,128], index: 2, kind: input, shape index: {}]   ;;  %s3414_s3 = inlined_call_operand.vmem [shape: f32[32,5], index: 3, kind: input, shape index: {}]   ;;  %s3415_s4 = inlined_call_operand.vmem [shape: bf16[2,32,96], index: 4, kind: input, shape index: {}]   ;;  %s3416_s5 = inlined_call_operand.vmem [shape: bf16[2,32,32], index: 5, kind: input, shape index: {}]   ;;  %s3417_s6 = inlined_call_operand.vmem [shape: bf16[2,32,64], index: 6, kind: input, shape index: {}]   ;;  %s3418_s7 = inlined_call_operand.vmem [shape: bf16[2,64,32], index: 7, kind: input, shape index: {}]   ;;  %s3419_s8 = inlined_call_operand.vmem [shape: f32[2,3,128], index: 8, kind: input, shape index: {}]   ;;  %s3420_s9 = inlined_call_operand.vmem [shape: f32[2,3,8,32], index: 9, kind: output, shape index: {0}]   ;;  %s3421_s10 = inlined_call_operand.vmem [shape: f32[2,2,8,32], index: 10, kind: output, shape index: {1}]   ;;  %s3422_s11 = inlined_call_operand.hbm [shape: f32[2,1,5], index: 11, kind: output, shape index: {2}]  }
   0x1   :  { %3444 = sst [smem:[#allocation5_spill]] %s3411_s0 }
   0x2   :  { %3445 = sst [smem:[#allocation6_spill]] %s3412_s1 }
   0x3   :  { %3446 = sst [smem:[#allocation7_spill]] %s3415_s4 }
   0x4   :  { %3447 = sst [smem:[#allocation8_spill]] %s3416_s5 }
   0x5   :  { %17 = vsyncpa [#allocation3], 0 }
   0x6   :  { %19 = vsyncpa [#allocation3 + $0x1], 0  ;;  %s2871_s17 = smov 0   ;;  %s2873_s18 = smov 0  }
   0x7   :  { %s2875_s19 = smov 0   ;;  %s2877_s20 = smov 0  }
   0x8 LB: > { %s2892_s21 = sadd.s32 4294967295, %s2791_s20   ;;  %s2284_s22 = sadd.s32 4294967294, %s2791_s20   ;;  %s2791_s20 = sphi %s2877_s20, %s3472_s20   ;;  %s2787_s19 = sphi %s2875_s19, %s3471_s19   ;;  %s2783_s18 = sphi %s2873_s18, %s3470_s18   ;;  %s2779_s17 = sphi %s2871_s17, %s3469_s17  }
   0x9   : > { %s2896_s23 = sadd.s32 1, %s2791_s20   ;;  %s283_s24 = sadd.s32 1, %s2787_s19 }
   0xa   : > { %s280_s25 = ssub.s32 %s2791_s20, %s2896_s23  ;;  %p293_p0 = scmp.ne.s32.totalorder %s2787_s19, %s2783_s18 }
   0xb   : > { %p281_p1 = scmp.eq.s32.totalorder %s280_s25, 0  ;;  %p294_p2 = scmp.eq.s32.totalorder %s2892_s21, 1 }
   0xc   : > { %p299_p3 = scmp.ne.s32.totalorder %s2783_s18, %s2779_s17  ;;  %p300_p4 = scmp.eq.s32.totalorder %s2284_s22, 1 }
   0xd   : > { %s2907_s26 = scalar_select %p281_p1, %s2787_s19, %s283_s24  }
   0xe   : > { %p2909_p5 = por %p294_p2, %p293_p0  ;;  %p2913_p6 = por %p300_p4, %p299_p3 }
   0xf   : > { %p2287_p7 = scmp.ge.s32.totalorder %s2791_s20, 1  ;;  %p352_p8 = scmp.lt.s32.totalorder %s2791_s20, 3 }
  0x11   : > { %p353_p9 = pnand %p2287_p7, %p352_p8 }
  0x12   : > { %p403_p10 = scmp.lt.s32.totalorder (!%p353_p9), %s2892_s21, 1  ;;  %vm426_vm0 = vcmask (!%p353_p9), 261120   ;;  %s3450_s0 = sld [smem:[#allocation5_spill]] (!%p353_p9)  ;;  %v2292_v2 = vld [vmem:[%s3413_s2] ss:$0 sm:$0xff] (!%p353_p9)  ;;  %v2794_v9 = vmov (!%p353_p9), 0.0   ;;  %v475_v20 = vlaneseq (!%p353_p9) }
  0x13   : > { %356 = sbr.rel (%p353_p9) target bundleno = 5709 (0x164d), region = 56  ;;  %s3438_s22 = smov (!%p353_p9), 96   ;;  %2429 = vmatprep.subr.bf16.mxu0 (!%p353_p9), %v2794_v9  ;;  %2437 = vmatprep.subr.bf16.mxu1 (!%p353_p9), %v2794_v9  ;;  %vm2795_vm1 = vmmov (!%p353_p9), 0   ;;  %v2971_v23 = vld [vmem:[%s3419_s8] sm:$0x7] (!%p353_p9)  ;;  %vm538_vm2 = vcmask (!%p353_p9), 64512  }
  0x14   : > { %448 = vrot.lane.b32.xlu1 (!%p353_p9), %v2292_v2, %s3438_s22  ;;  %s3451_s4 = sld [smem:[#allocation7_spill]] (!%p353_p9)  ;;  %2433 = vmatprep.mubr.msk.bf16.mxu0 (!%p353_p9), %vm2795_vm1, %v2794_v9  ;;  %v2963_v21 = vshrl.u32 (!%p353_p9), %v475_v20, 7  ;;  %s3429_s12 = smov (!%p353_p9), 120   ;;  %vm610_vm3 = vcmask (!%p353_p9), 1043456   ;;  %vm1003_vm4 = vcmask (!%p353_p9), 130048   ;;  %vm1005_vm5 = vcmask (!%p353_p9), 195584  }
  0x15   : > { %2439 = vmatprep.mubr.msk.bf16.mxu1 (!%p353_p9), %vm2795_vm1, %v2794_v9  ;;  %s3425_s15 = smov (!%p353_p9), 72   ;;  %s3423_s24 = smov (!%p353_p9), 104   ;;  %vm1203_vm6 = vcmask (!%p353_p9), 523264   ;;  %vm2139_vm7 = vcmask (!%p353_p9), 32768  }
  0x16   : > { %v2966_v22 = vsub.s32 (!%p353_p9), 0, %v2963_v21  ;;  %s3452_s1 = sld [smem:[#allocation6_spill]] (!%p353_p9)  ;;  %s3426_s25 = smov (!%p353_p9), 40  }
  0x17   : > { %s3453_s5 = sld [smem:[#allocation8_spill]] (!%p353_p9) }
  0x18   : > { %v478_v24 = vrot.slane (!%p353_p9), %v2971_v23, %v2966_v22 }
  0x1a   : > { %s2921_s29 = scalar_select %p403_p10, %s2892_s21, 1  ;;  %v2662_v8 = vld [vmem:[%s3451_s4] sm:$0xff]   ;;  %v2663_v10 = vld [vmem:[%s3451_s4 + $0x8] sm:$0xff]  }
  0x1b   : > { %2430 = vmatpush3.bf16.msra.mxu0 %v2662_v8 }
  0x1c   : > { %s2288_s30 = sshll.u32 %s2921_s29, 3  ;;  %2431 = vmatprep.subr.bf16.mxu0 %v2794_v9  ;;  %s2605_s13 = smul.u32 24, %s2921_s29 }
  0x1d   : > { %s406_s14 = scalar_lea.vmem %s3450_s0, %s2288_s30  ;;  %s3431_s30 = smov 88  }
  0x1e   : > { %v421_v0 = vld [vmem:[%s406_s14] sm:$0xff]  ;;  %s2951_s16 = scalar_lea.vmem %s3420_s9, %s2605_s13  ;;  %s3430_s13 = smov 80  }
  0x1f   : > { %v427_v1 = vsel %vm426_vm0, %v421_v0, 0.0  ;;  %2432 = vmatpush3.bf16.msra.mxu0 %v2663_v10  ;;  %s3424_s14 = smov 112  }
  0x20   : > { %428 = vadd.xlane.f32.xlu0 %v427_v1  ;;  %2443 = vmatprep.subr.bf16.mxu0 %v2794_v9 }
  0x86   : > { %v449_v16 = vpop.permute.xlu1 %448 }
  0xad   : > { %v429_v3 = vpop.xlane.xlu0 %428 }
  0xae   : > { %v431_v4 = vmul.f32 0.03125, %v429_v3 }
  0xb0   : > { %v432_v5 = vsub.f32 %v421_v0, %v431_v4 }
  0xb2   : > { %v433_v6 = vmul.f32 %v432_v5, %v432_v5 }
  0xb4   : > { %v434_v7 = vsel %vm426_vm0, %v433_v6, 0.0 }
  0xb5   : > { %435 = vadd.xlane.f32.xlu0 %v434_v7 }
 0x142   : > { %v436_v11 = vpop.xlane.xlu0 %435 }
 0x143   : > { %v437_v12 = vmul.f32 0.03125, %v436_v11 }
 0x145   : > { %v438_v13 = vadd.f32 1e-12, %v437_v12 }
 0x147   : > { %2682 = vrsqrt.f32 %v438_v13 }
 0x151   : > { %v2683_v14 = vpop.eup %2682 }
 0x152   : > { %v440_v15 = vmul.f32 %v2683_v14, %v432_v5 }
 0x154   : > { %v447_v17 = vmul.f32 %v2292_v2, %v440_v15 }
 0x156   : > { %v2953_v18 = vadd.f32 %v449_v16, %v447_v17 }
 0x158   : > { %452 = vst.msk [vmem:[%s2951_s16] sm:$0xff] %vm426_vm0, %v2953_v18  ;;  %v474_v19 = vpack.c.bf16 %v2953_v18, %v2953_v18 }
 0x15a   : > { %2434 = vmatmul.mubr.msk.bf16.vlgmr.msra.gmra.mrb[0].mxu0 %vm426_vm0, %v474_v19 }
 0x15b   : > { %2445 = vmatprep.mubr.msk.bf16.mxu0 %vm2795_vm1, %v2794_v9 }
 0x22d   : > { %v528_v25 = vpop.f32.mrb[0].mxu0 }
 0x22e   : > { %v529_v26 = vadd.f32 %v528_v25, %v478_v24  ;;  %v2435_v27 = vpop.f32.mrb[1].mxu0 }
 0x22f   : > { %v531_v28 = vpop.f32.mrb[2].mxu0 }
 0x230   : > { %v2975_v29 = vpack.c.bf16 %v529_v26, %v529_v26  ;;  %v2436_v30 = vpop.f32.mrb[3].mxu0 }
 0x232   : > { %656 = vrot.lane.b32.xlu0 %v2975_v29, %s3431_s30  ;;  %536 = vrot.lane.b32.xlu1 %v2975_v29, %s3438_s22  ;;  %s3434_s30 = smov 16  }
 0x236   : > { %654 = vrot.lane.b32.xlu1 %v2975_v29, %s3429_s12  ;;  %s3440_s12 = smov 32  }
 0x23a   : > { %768 = vrot.lane.b32.xlu1 %v2975_v29, %s3430_s13  ;;  %s3457_s13 = smov 120  }
 0x23e   : > { %766 = vrot.lane.b32.xlu1 %v2975_v29, %s3424_s14  ;;  %s409_s14 = scalar_lea.vmem %s3452_s1, %s2921_s29  ;;  %s2362_s1 = sshll.u32 %s2892_s21, 4 }
 0x23f   : > { %v422_v42 = vld [vmem:[%s409_s14] sm:$0x1]  ;;  %s3428_s14 = smov 56  }
 0x240   : > { %v423_v43 = vsub.f32 1.0, %v422_v42 }
 0x242   : > { %880 = vrot.lane.b32.xlu1 %v2975_v29, %s3425_s15  ;;  %v424_v44 = vmul.f32 -10000.0, %v423_v43  ;;  %s3427_s15 = smov 48  }
 0x244   : > { %v3017_v45 = vrot.slane %v424_v44, %v2966_v22 }
 0x246   : > { %878 = vrot.lane.b32.xlu1 %v2975_v29, %s3423_s24  ;;  %s3442_s24 = smov 64  }
 0x2a4   : > { %v537_v31 = vpop.permute.xlu1 %536  ;;  %v657_v34 = vpop.permute.xlu0 %656 }
 0x2a5   : > { %v543_v32 = vsel %vm538_vm2, %v537_v31, 0  ;;  %v662_v35 = vsel %vm538_vm2, %v657_v34, 0 }
 0x2a6   : > { %2438 = vmatpush3.bf16.xpose.msra.mxu1 %v543_v32 }
 0x2a7   : > { %2449 = vmatprep.subr.bf16.mxu1 %v2794_v9 }
 0x2a8   : > { %v655_v33 = vpop.permute.xlu1 %654 }
 0x2ac   : > { %v769_v36 = vpop.permute.xlu1 %768 }
 0x2ad   : > { %2440 = vmatmul.mubr.msk.bf16.vlgmr.msra.gmra.mrb[0].mxu1 %vm538_vm2, %v2975_v29  ;;  %v774_v38 = vsel %vm538_vm2, %v769_v36, 0 }
 0x2ae   : > { %2450 = vmatpush3.bf16.xpose.msra.mxu1 %v662_v35  ;;  %2451 = vmatprep.mubr.msk.bf16.mxu1 %vm2795_vm1, %v2794_v9 }
 0x2af   : > { %2461 = vmatprep.subr.bf16.mxu1 %v2794_v9 }
 0x2b0   : > { %v767_v37 = vpop.permute.xlu1 %766 }
 0x2b4   : > { %v881_v39 = vpop.permute.xlu1 %880 }
 0x2b5   : > { %2452 = vmatmul.mubr.msk.bf16.vlgmr.msra.gmra.mrb[4].mxu1 %vm538_vm2, %v655_v33  ;;  %v886_v40 = vsel %vm538_vm2, %v881_v39, 0 }
 0x2b6   : > { %2462 = vmatpush3.bf16.xpose.msra.mxu1 %v774_v38  ;;  %2463 = vmatprep.mubr.msk.bf16.mxu1 %vm2795_vm1, %v2794_v9 }
 0x2b7   : > { %2473 = vmatprep.subr.bf16.mxu1 %v2794_v9 }
 0x2b8   : > { %v879_v41 = vpop.permute.xlu1 %878 }
 0x2bd   : > { %2464 = vmatmul.mubr.msk.bf16.vlgmr.msra.gmra.mrb[8].mxu1 %vm538_vm2, %v767_v37 }
 0x2be   : > { %2474 = vmatpush3.bf16.xpose.msra.mxu1 %v886_v40  ;;  %2475 = vmatprep.mubr.msk.bf16.mxu1 %vm2795_vm1, %v2794_v9 }
 0x2bf   : > { %2485 = vmatprep.subr.bf16.mxu1 %v2794_v9 }
 0x2c5   : > { %2476 = vmatmul.mubr.msk.bf16.vlgmr.msra.gmra.mrb[12].mxu1 %vm538_vm2, %v879_v41 }
 0x2c6   : > { %2489 = vmatprep.mubr.msk.bf16.mxu1 %vm2795_vm1, %v2794_v9 }
 0x380   : > { %v579_v46 = vpop.f32.mrb[0].mxu1 }
 0x381   : > { %v585_v47 = vmul.f32 0.35355338, %v579_v46  ;;  %v2441_v48 = vpop.f32.mrb[1].mxu1 }
 0x382   : > { %v582_v49 = vpop.f32.mrb[2].mxu1 }
 0x383   : > { %v2442_v50 = vpop.f32.mrb[3].mxu1  ;;  %v592_v51 = vadd.f32 %v3017_v45, %v585_v47 }
 0x385   : > { %v593_v52 = vsel %vm538_vm2, %v592_v51, -inf }
 0x386   : > { %594 = vmax.xlane.f32.xlu1 %v593_v52 }
 0x388   : > { %v698_v53 = vpop.f32.mrb[4].mxu1 }
 0x389   : > { %v704_v54 = vmul.f32 0.35355338, %v698_v53  ;;  %v2453_v55 = vpop.f32.mrb[5].mxu1 }
 0x38a   : > { %v701_v56 = vpop.f32.mrb[6].mxu1 }
 0x38b   : > { %v2454_v57 = vpop.f32.mrb[7].mxu1  ;;  %v705_v58 = vadd.f32 %v704_v54, %v3017_v45 }
 0x38d   : > { %v706_v59 = vsel %vm538_vm2, %v705_v58, -inf }
 0x38e   : > { %707 = vmax.xlane.f32.xlu0 %v706_v59 }
 0x390   : > { %v810_v60 = vpop.f32.mrb[8].mxu1 }
 0x391   : > { %v816_v61 = vmul.f32 0.35355338, %v810_v60  ;;  %v2465_v62 = vpop.f32.mrb[9].mxu1 }
 0x392   : > { %v813_v63 = vpop.f32.mrb[10].mxu1 }
 0x393   : > { %v2466_v0 = vpop.f32.mrb[11].mxu1  ;;  %v817_v1 = vadd.f32 %v816_v61, %v3017_v45 }
 0x395   : > { %v818_v2 = vsel %vm538_vm2, %v817_v1, -inf }
 0x396   : > { %819 = vmax.xlane.f32.xlu0 %v818_v2 }
 0x398   : > { %v922_v3 = vpop.f32.mrb[12].mxu1 }
 0x399   : > { %v928_v4 = vmul.f32 0.35355338, %v922_v3  ;;  %v2477_v5 = vpop.f32.mrb[13].mxu1 }
 0x39a   : > { %v925_v6 = vpop.f32.mrb[14].mxu1  ;;  %v2665_v5 = vld [vmem:[%s3453_s5 + $0x8] sm:$0xff]  }
 0x39b   : > { %v2478_v7 = vpop.f32.mrb[15].mxu1  ;;  %v929_v8 = vadd.f32 %v928_v4, %v3017_v45  ;;  %v2664_v4 = vld [vmem:[%s3453_s5] sm:$0xff]  }
 0x39c   : > { %2486 = vmatpush3.bf16.msra.mxu1 %v2664_v4 }
 0x39d   : > { %v930_v10 = vsel %vm538_vm2, %v929_v8, -inf  ;;  %2487 = vmatprep.subr.bf16.mxu1 %v2794_v9 }
 0x39e   : > { %931 = vmax.xlane.f32.xlu1 %v930_v10 }
 0x3a0   : > { %2488 = vmatpush3.bf16.msra.mxu1 %v2665_v5 }
 0x3a1   : > { %2501 = vmatprep.subr.bf16.mxu1 %v2794_v9 }
 0x413   : > { %v595_v11 = vpop.xlane.xlu1 %594 }
 0x414   : > { %v596_v12 = vsub.f32 %v592_v51, %v595_v11 }
 0x416   : > { %v597_v13 = vmul.f32 1.442695, %v596_v12 }
 0x418   : > { %2684 = vpow2.f32 %v597_v13 }
 0x41b   : > { %v708_v14 = vpop.xlane.xlu0 %707 }
 0x41c   : > { %v709_v15 = vsub.f32 %v705_v58, %v708_v14 }
 0x41e   : > { %v710_v16 = vmul.f32 1.442695, %v709_v15 }
 0x420   : > { %2686 = vpow2.f32 %v710_v16 }
 0x422   : > { %v2685_v17 = vpop.eup %2684 }
 0x423   : > { %v820_v19 = vpop.xlane.xlu0 %819  ;;  %v599_v20 = vsel %vm538_vm2, %v2685_v17, 0.0 }
 0x424   : > { %v821_v24 = vsub.f32 %v817_v1, %v820_v19  ;;  %600 = vadd.xlane.f32.xlu0 %v599_v20 }
 0x426   : > { %v822_v25 = vmul.f32 1.442695, %v821_v24 }
 0x428   : > { %2688 = vpow2.f32 %v822_v25 }
 0x42a   : > { %v2687_v26 = vpop.eup %2686 }
 0x42b   : > { %v712_v27 = vsel %vm538_vm2, %v2687_v26, 0.0  ;;  %v932_v31 = vpop.xlane.xlu1 %931 }
 0x42c   : > { %713 = vadd.xlane.f32.xlu1 %v712_v27  ;;  %v933_v32 = vsub.f32 %v929_v8, %v932_v31 }
 0x42e   : > { %v934_v33 = vmul.f32 1.442695, %v933_v32 }
 0x430   : > { %2690 = vpow2.f32 %v934_v33 }
 0x432   : > { %v2689_v28 = vpop.eup %2688 }
 0x433   : > { %v824_v30 = vsel %vm538_vm2, %v2689_v28, 0.0 }
 0x434   : > { %825 = vadd.xlane.f32.xlu0 %v824_v30 }
 0x43a   : > { %v2691_v34 = vpop.eup %2690 }
 0x43b   : > { %v936_v35 = vsel %vm538_vm2, %v2691_v34, 0.0 }
 0x43d   : > { %718 = vrot.lane.b32.xlu1 %v2975_v29, %s3428_s14  ;;  %s3458_s14 = smov 72  }
 0x44a   : > { %605 = vrot.lane.b32.xlu0 %v2975_v29, %s3442_s24 }
 0x44e   : > { %942 = vrot.lane.b32.xlu0 %v2975_v29, %s3426_s25  ;;  %s3436_s25 = smov 8  }
 0x461   : > { %937 = vadd.xlane.f32.xlu1 %v936_v35 }
 0x472   : > { %830 = vrot.lane.b32.xlu1 %v2975_v29, %s3427_s15  ;;  %s3432_s15 = smov 24  }
 0x4b1   : > { %v601_v36 = vpop.xlane.xlu0 %600 }
 0x4b2   : > { %2692 = vrcp.f32 %v601_v36 }
 0x4b9   : > { %v714_v37 = vpop.xlane.xlu1 %713 }
 0x4ba   : > { %2694 = vrcp.f32 %v714_v37 }
 0x4bc   : > { %v2693_v38 = vpop.eup %2692 }
 0x4bd   : > { %v3039_v40 = vmul.f32 %v2693_v38, %v2685_v17  ;;  %v719_v43 = vpop.permute.xlu1 %718 }
 0x4be   : > { %v724_v46 = vsel %vm610_vm3, %v719_v43, 0 }
 0x4bf   : > { %v604_v44 = vpack.c.bf16 %v3039_v40, %v3039_v40 }
 0x4c1   : > { %v826_v39 = vpop.xlane.xlu0 %825 }
 0x4c2   : > { %2696 = vrcp.f32 %v826_v39 }
 0x4c4   : > { %v2695_v29 = vpop.eup %2694 }
 0x4c5   : > { %v606_v41 = vpop.permute.xlu0 %605  ;;  %v3049_v47 = vmul.f32 %v2695_v29, %v2687_v26  ;;  %v1026_v26 = vsub.s32 1, %v2963_v21 }
 0x4c6   : > { %v612_v42 = vsel %vm610_vm3, %v606_v41, 0 }
 0x4c7   : > { %2444 = vmatpush3.bf16.msra.mxu0 %v612_v42  ;;  %v717_v48 = vpack.c.bf16 %v3049_v47, %v3049_v47  ;;  %v1027_v27 = vrot.slane %v2971_v23, %v1026_v26  ;;  %v2666_v42 = vld [vmem:[%s3417_s6] sm:$0xff]  }
 0x4c8   : > { %2455 = vmatprep.subr.bf16.mxu0 %v2794_v9 }
 0x4c9   : > { %v943_v54 = vpop.permute.xlu0 %942 }
 0x4ca   : > { %2446 = vmatmul.mubr.msk.bf16.vlgmr.msra.gmra.mrb[4].mxu0 %vm538_vm2, %v604_v44  ;;  %v948_v56 = vsel %vm610_vm3, %v943_v54, 0 }
 0x4cb   : > { %2456 = vmatpush3.bf16.msra.mxu0 %v724_v46  ;;  %2457 = vmatprep.mubr.msk.bf16.mxu0 %vm2795_vm1, %v2794_v9 }
 0x4cc   : > { %2467 = vmatprep.subr.bf16.mxu0 %v2794_v9  ;;  %v2697_v49 = vpop.eup %2696 }
 0x4cd   : > { %v3057_v51 = vmul.f32 %v2697_v49, %v2689_v28 }
 0x4cf   : > { %v829_v55 = vpack.c.bf16 %v3057_v51, %v3057_v51 }
 0x4d2   : > { %2458 = vmatmul.mubr.msk.bf16.vlgmr.msra.gmra.mrb[8].mxu0 %vm538_vm2, %v717_v48 }
 0x4d3   : > { %2469 = vmatprep.mubr.msk.bf16.mxu0 %vm2795_vm1, %v2794_v9 }
 0x4ee   : > { %v938_v50 = vpop.xlane.xlu1 %937 }
 0x4ef   : > { %2698 = vrcp.f32 %v938_v50 }
 0x4f2   : > { %v831_v52 = vpop.permute.xlu1 %830 }
 0x4f3   : > { %v836_v53 = vsel %vm610_vm3, %v831_v52, 0 }
 0x4f4   : > { %2468 = vmatpush3.bf16.msra.mxu0 %v836_v53 }
 0x4f5   : > { %2479 = vmatprep.subr.bf16.mxu0 %v2794_v9 }
 0x4f7   : > { %2470 = vmatmul.mubr.msk.bf16.vlgmr.msra.gmra.mrb[12].mxu0 %vm538_vm2, %v829_v55  ;;  %v2668_v55 = vld [vmem:[%s3418_s7] sm:$0xff]  }
 0x4f8   : > { %2480 = vmatpush3.bf16.msra.mxu0 %v948_v56  ;;  %2481 = vmatprep.mubr.msk.bf16.mxu0 %vm2795_vm1, %v2794_v9  ;;  %v2669_v56 = vld [vmem:[%s3418_s7 + $0x8] sm:$0xff]  }
 0x4f9   : > { %v2699_v57 = vpop.eup %2698  ;;  %2493 = vmatprep.subr.bf16.mxu0 %v2794_v9 }
 0x4fa   : > { %v3068_v58 = vmul.f32 %v2699_v57, %v2691_v34  ;;  %v2670_v57 = vld [vmem:[%s3418_s7 + $0x10] sm:$0xff]  }
 0x4fc   : > { %v941_v59 = vpack.c.bf16 %v3068_v58, %v3068_v58 }
 0x4ff   : > { %2482 = vmatmul.mubr.msk.bf16.vlgmr.msra.gmra.mrb[16].mxu0 %vm538_vm2, %v941_v59  ;;  %v2671_v59 = vld [vmem:[%s3418_s7 + $0x18] sm:$0xff]  }
 0x500   : > { %2497 = vmatprep.mubr.msk.bf16.mxu0 %vm2795_vm1, %v2794_v9  ;;  %2494 = vmatpush3.bf16.msra.mxu0 %v2666_v42 }
 0x501   : > { %2495 = vmatprep.subr.bf16.mxu0 %v2794_v9 }
 0x59d   : > { %v648_v60 = vpop.f32.mrb[4].mxu0 }
 0x59e   : > { %v2447_v61 = vpop.f32.mrb[5].mxu0 }
 0x59f   : > { %v651_v62 = vpop.f32.mrb[6].mxu0 }
 0x5a0   : > { %v2448_v63 = vpop.f32.mrb[7].mxu0 }
 0x5a5   : > { %v760_v0 = vpop.f32.mrb[8].mxu0 }
 0x5a6   : > { %1009 = vrot.lane.b32.xlu1 %v760_v0, %s3436_s25  ;;  %v2459_v1 = vpop.f32.mrb[9].mxu0  ;;  %s3456_s25 = smov 80  }
 0x5a7   : > { %v763_v2 = vpop.f32.mrb[10].mxu0 }
 0x5a8   : > { %v2460_v3 = vpop.f32.mrb[11].mxu0 }
 0x5ca   : > { %v872_v6 = vpop.f32.mrb[12].mxu0 }
 0x5cb   : > { %1013 = vrot.lane.b32.xlu0 %v872_v6, %s3434_s30  ;;  %v2471_v7 = vpop.f32.mrb[13].mxu0  ;;  %s3455_s30 = smov 96  }
 0x5cc   : > { %v875_v8 = vpop.f32.mrb[14].mxu0 }
 0x5cd   : > { %v2472_v10 = vpop.f32.mrb[15].mxu0 }
 0x5d2   : > { %v984_v11 = vpop.f32.mrb[16].mxu0 }
 0x5d3   : > { %1017 = vrot.lane.b32.xlu1 %v984_v11, %s3432_s15  ;;  %v2483_v12 = vpop.f32.mrb[17].mxu0  ;;  %s3459_s15 = smov 112  }
 0x5d4   : > { %v987_v13 = vpop.f32.mrb[18].mxu0 }
 0x5d5   : > { %v2484_v14 = vpop.f32.mrb[19].mxu0 }
 0x618   : > { %v1010_v15 = vpop.permute.xlu1 %1009 }
 0x619   : > { %v1020_v17 = vsel %vm538_vm2, %v648_v60, %v1010_v15  ;;  %v1109_v60 = vsub.s32 2, %v2963_v21 }
 0x61b   : > { %v1110_v61 = vrot.slane %v2971_v23, %v1109_v60 }
 0x63d   : > { %v1014_v16 = vpop.permute.xlu0 %1013 }
 0x63e   : > { %v1021_v19 = vsel %vm1003_vm4, %v1020_v17, %v1014_v16 }
 0x645   : > { %v1018_v20 = vpop.permute.xlu1 %1017 }
 0x646   : > { %v1022_v24 = vsel %vm1005_vm5, %v1021_v19, %v1018_v20 }
 0x647   : > { %v1023_v25 = vpack.c.bf16 %v1022_v24, %v1022_v24 }
 0x649   : > { %2490 = vmatmul.mubr.msk.bf16.vlgmr.msra.gmra.mrb[16].mxu1 %vm426_vm0, %v1023_v25 }
 0x64a   : > { %2509 = vmatprep.mubr.msk.bf16.mxu1 %vm2795_vm1, %v2794_v9  ;;  %2502 = vmatpush3.bf16.msra.mxu1 %v2668_v55 }
 0x64b   : > { %2503 = vmatprep.subr.bf16.mxu1 %v2794_v9 }
 0x64e   : > { %2504 = vmatpush3.bf16.msra.mxu1 %v2669_v56 }
 0x64f   : > { %2505 = vmatprep.subr.bf16.mxu1 %v2794_v9 }
 0x652   : > { %2506 = vmatpush3.bf16.msra.mxu1 %v2670_v57 }
 0x653   : > { %2507 = vmatprep.subr.bf16.mxu1 %v2794_v9 }
 0x656   : > { %2508 = vmatpush3.bf16.msra.mxu1 %v2671_v59 }
 0x657   : > { %2527 = vmatprep.subr.bf16.mxu1 %v2794_v9 }
 0x71c   : > { %v1077_v28 = vpop.f32.mrb[16].mxu1 }
 0x71d   : > { %v1078_v30 = vadd.f32 %v1077_v28, %v1027_v27  ;;  %v2491_v31 = vpop.f32.mrb[17].mxu1 }
 0x71e   : > { %v1080_v32 = vpop.f32.mrb[18].mxu1 }
 0x71f   : > { %v2492_v33 = vpop.f32.mrb[19].mxu1  ;;  %v1083_v34 = vadd.f32 %v1078_v30, %v2953_v18  ;;  %v2667_v18 = vld [vmem:[%s3417_s6 + $0x8] sm:$0xff]   ;;  %v2672_v32 = vld [vmem:[%s3451_s4 + $0x10] sm:$0xff]  }
 0x720   : > { %2496 = vmatpush3.bf16.msra.mxu0 %v2667_v18  ;;  %v2673_v33 = vld [vmem:[%s3451_s4 + $0x18] sm:$0xff]  }
 0x721   : > { %v1084_v35 = vsel %vm426_vm0, %v1083_v34, 0.0  ;;  %2513 = vmatprep.subr.bf16.mxu0 %v2794_v9 }
 0x722   : > { %1085 = vadd.xlane.f32.xlu0 %v1084_v35 }
 0x738   : > { %1098 = vrot.lane.b32.xlu0 %v1027_v27, %s3438_s22  ;;  %s3454_s22 = smov 88  }
 0x73c   : > { %1200 = vrot.lane.b32.xlu0 %v1027_v27, %s3440_s12 }
 0x7af   : > { %v1086_v36 = vpop.xlane.xlu0 %1085 }
 0x7b0   : > { %v1087_v37 = vmul.f32 0.03125, %v1086_v36 }
 0x7b2   : > { %v1088_v38 = vsub.f32 %v1083_v34, %v1087_v37 }
 0x7b3   : > { %v1099_v48 = vpop.permute.xlu0 %1098 }
 0x7b4   : > { %v1089_v39 = vmul.f32 %v1088_v38, %v1088_v38 }
 0x7b6   : > { %v1090_v41 = vsel %vm426_vm0, %v1089_v39, 0.0 }
 0x7b7   : > { %1091 = vadd.xlane.f32.xlu1 %v1090_v41  ;;  %v1201_v23 = vpop.permute.xlu0 %1200 }
 0x7c8   : > { %1102 = vrot.lane.b32.xlu1 %v1027_v27, %s3442_s24 }
 0x844   : > { %v1092_v43 = vpop.xlane.xlu1 %1091 }
 0x845   : > { %v1093_v44 = vmul.f32 0.03125, %v1092_v43 }
 0x847   : > { %v1094_v29 = vadd.f32 1e-12, %v1093_v44  ;;  %v3161_v44 = vld [vmem:[%s3419_s8 + $0x4] sm:$0x7] }
 0x848   : > { %v1103_v50 = vpop.permute.xlu1 %1102 }
 0x849   : > { %2700 = vrsqrt.f32 %v1094_v29  ;;  %v1302_v29 = vrot.slane %v3161_v44, %v2966_v22 }
 0x853   : > { %v2701_v46 = vpop.eup %2700 }
 0x854   : > { %v1096_v49 = vmul.f32 %v2701_v46, %v1088_v38 }
 0x856   : > { %v1101_v52 = vmul.f32 %v1099_v48, %v1096_v49 }
 0x858   : > { %v1105_v53 = vadd.f32 %v1103_v50, %v1101_v52 }
 0x85a   : > { %v1106_v54 = vpack.c.bf16 %v1105_v53, %v1105_v53 }
 0x85c   : > { %2498 = vmatmul.mubr.msk.bf16.vlgmr.msra.gmra.mrb[20].mxu0 %vm426_vm0, %v1106_v54 }
 0x85d   : > { %2517 = vmatprep.mubr.msk.bf16.mxu0 %vm2795_vm1, %v2794_v9  ;;  %2514 = vmatpush3.bf16.msra.mxu0 %v2672_v32 }
 0x85e   : > { %2515 = vmatprep.subr.bf16.mxu0 %v2794_v9 }
 0x861   : > { %2516 = vmatpush3.bf16.msra.mxu0 %v2673_v33 }
 0x862   : > { %2521 = vmatprep.subr.bf16.mxu0 %v2794_v9 }
 0x92f   : > { %v1160_v62 = vpop.f32.mrb[20].mxu0 }
 0x930   : > { %v1161_v63 = vadd.f32 %v1160_v62, %v1110_v61  ;;  %v2499_v0 = vpop.f32.mrb[21].mxu0 }
 0x931   : > { %v1163_v1 = vpop.f32.mrb[22].mxu0 }
 0x932   : > { %v1166_v2 = vmul.f32 %v1161_v63, %v1161_v63  ;;  %v2500_v3 = vpop.f32.mrb[23].mxu0 }
 0x934   : > { %v1167_v4 = vmul.f32 %v1166_v2, %v1161_v63 }
 0x936   : > { %v1168_v5 = vmul.f32 0.044715, %v1167_v4 }
 0x938   : > { %v1169_v6 = vadd.f32 %v1168_v5, %v1161_v63 }
 0x93a   : > { %v1170_v7 = vmul.f32 0.7978846, %v1169_v6 }
 0x93c   : > { %2702 = vtanh.f32 %v1170_v7 }
 0x946   : > { %v2703_v8 = vpop.eup %2702 }
 0x947   : > { %v1172_v10 = vadd.f32 1.0, %v2703_v8 }
 0x949   : > { %v1173_v11 = vmul.f32 0.5, %v1172_v10 }
 0x94b   : > { %v1174_v12 = vmul.f32 %v1173_v11, %v1161_v63 }
 0x94d   : > { %v1175_v13 = vpack.c.bf16 %v1174_v12, %v1174_v12 }
 0x94f   : > { %2510 = vmatmul.mubr.msk.bf16.vlgmr.msra.gmra.mrb[20].mxu1 %vm1203_vm6, %v1175_v13 }
 0x950   : > { %2529 = vmatprep.mubr.msk.bf16.mxu1 %vm2795_vm1, %v2794_v9 }
 0xa22   : > { %v1241_v14 = vpop.f32.mrb[20].mxu1 }
 0xa23   : > { %v1242_v15 = vadd.f32 %v1241_v14, %v1201_v23  ;;  %v2511_v16 = vpop.f32.mrb[21].mxu1 }
 0xa24   : > { %v1244_v17 = vpop.f32.mrb[22].mxu1 }
 0xa25   : > { %v2512_v19 = vpop.f32.mrb[23].mxu1  ;;  %v1247_v20 = vadd.f32 %v1242_v15, %v1105_v53 }
 0xa27   : > { %v1248_v24 = vsel %vm426_vm0, %v1247_v20, 0.0 }
 0xa28   : > { %1249 = vadd.xlane.f32.xlu1 %v1248_v24 }
 0xa39   : > { %1266 = vrot.lane.b32.xlu1 %v1110_v61, %s3440_s12  ;;  %s3460_s12 = smov 104  }
 0xab5   : > { %v1250_v25 = vpop.xlane.xlu1 %1249 }
 0xab6   : > { %v1251_v27 = vmul.f32 0.03125, %v1250_v25 }
 0xab8   : > { %v1252_v28 = vsub.f32 %v1247_v20, %v1251_v27 }
 0xab9   : > { %v1267_v41 = vpop.permute.xlu1 %1266 }
 0xaba   : > { %v1253_v30 = vmul.f32 %v1252_v28, %v1252_v28 }
 0xabc   : > { %v1254_v31 = vsel %vm426_vm0, %v1253_v30, 0.0 }
 0xabd   : > { %1255 = vadd.xlane.f32.xlu0 %v1254_v31 }
 0xad3   : > { %1262 = vrot.lane.b32.xlu0 %v1110_v61, %s3442_s24 }
 0xb4a   : > { %v1256_v34 = vpop.xlane.xlu0 %1255 }
 0xb4b   : > { %v1257_v35 = vmul.f32 0.03125, %v1256_v34 }
 0xb4d   : > { %v1258_v36 = vadd.f32 1e-12, %v1257_v35 }
 0xb4e   : > { %v1263_v38 = vpop.permute.xlu0 %1262 }
 0xb4f   : > { %2704 = vrsqrt.f32 %v1258_v36 }
 0xb59   : > { %v2705_v37 = vpop.eup %2704 }
 0xb5a   : > { %v1260_v39 = vmul.f32 %v2705_v37, %v1252_v28 }
 0xb5c   : > { %v1265_v42 = vmul.f32 %v1263_v38, %v1260_v39 }
 0xb5e   : > { %v3148_v18 = vadd.f32 %v1267_v41, %v1265_v42 }
 0xb60   : > { %2315 = vst.msk [vmem:[%s2951_s16 + $0x8] sm:$0xff] %vm426_vm0, %v3148_v18  ;;  %v1298_v43 = vpack.c.bf16 %v3148_v18, %v3148_v18 }
 0xb62   : > { %2518 = vmatmul.mubr.msk.bf16.vlgmr.msra.gmra.mrb[24].mxu0 %vm426_vm0, %v1298_v43 }
 0xb63   : > { %2523 = vmatprep.mubr.msk.bf16.mxu0 %vm2795_vm1, %v2794_v9 }
 0xc35   : > { %v1352_v46 = vpop.f32.mrb[24].mxu0 }
 0xc36   : > { %v1353_v48 = vadd.f32 %v1352_v46, %v1302_v29  ;;  %v2519_v49 = vpop.f32.mrb[25].mxu0 }
 0xc37   : > { %v1355_v50 = vpop.f32.mrb[26].mxu0 }
 0xc38   : > { %v3165_v52 = vpack.c.bf16 %v1353_v48, %v1353_v48  ;;  %v2520_v53 = vpop.f32.mrb[27].mxu0 }
 0xc3a   : > { %1472 = vrot.lane.b32.xlu0 %v3165_v52, %s3454_s22  ;;  %1360 = vrot.lane.b32.xlu1 %v3165_v52, %s3455_s30  ;;  %s3462_s22 = smov 48  }
 0xc3e   : > { %1584 = vrot.lane.b32.xlu0 %v3165_v52, %s3456_s25  ;;  %1470 = vrot.lane.b32.xlu1 %v3165_v52, %s3457_s13  ;;  %s3463_s25 = smov 40   ;;  %s3464_s13 = smov 8  }
 0xc42   : > { %1696 = vrot.lane.b32.xlu0 %v3165_v52, %s3458_s14  ;;  %1582 = vrot.lane.b32.xlu1 %v3165_v52, %s3459_s15  ;;  %s3467_s14 = smov 64   ;;  %s3468_s15 = smov 32  }
 0xc46   : > { %1694 = vrot.lane.b32.xlu1 %v3165_v52, %s3460_s12  ;;  %s3461_s12 = smov 56  }
 0xcac   : > { %v1361_v22 = vpop.permute.xlu1 %1360  ;;  %v1473_v55 = vpop.permute.xlu0 %1472 }
 0xcad   : > { %v1366_v54 = vsel %vm538_vm2, %v1361_v22, 0  ;;  %v1478_v56 = vsel %vm538_vm2, %v1473_v55, 0 }
 0xcae   : > { %2522 = vmatpush3.bf16.xpose.msra.mxu0 %v1366_v54 }
 0xcaf   : > { %2533 = vmatprep.subr.bf16.mxu0 %v2794_v9 }
 0xcb0   : > { %v1585_v57 = vpop.permute.xlu0 %1584  ;;  %v1471_v59 = vpop.permute.xlu1 %1470 }
 0xcb1   : > { %v1590_v61 = vsel %vm538_vm2, %v1585_v57, 0 }
 0xcb4   : > { %v1697_v62 = vpop.permute.xlu0 %1696  ;;  %v1583_v63 = vpop.permute.xlu1 %1582 }
 0xcb5   : > { %2524 = vmatmul.mubr.msk.bf16.vlgmr.msra.gmra.mrb[28].mxu0 %vm538_vm2, %v3165_v52  ;;  %v1702_v0 = vsel %vm538_vm2, %v1697_v62, 0 }
 0xcb6   : > { %2534 = vmatpush3.bf16.xpose.msra.mxu0 %v1478_v56  ;;  %2535 = vmatprep.mubr.msk.bf16.mxu0 %vm2795_vm1, %v2794_v9 }
 0xcb7   : > { %2545 = vmatprep.subr.bf16.mxu0 %v2794_v9 }
 0xcb8   : > { %v1695_v1 = vpop.permute.xlu1 %1694 }
 0xcbd   : > { %2536 = vmatmul.mubr.msk.bf16.vlgmr.msra.gmra.mrb[32].mxu0 %vm538_vm2, %v1471_v59 }
 0xcbe   : > { %2546 = vmatpush3.bf16.xpose.msra.mxu0 %v1590_v61  ;;  %2547 = vmatprep.mubr.msk.bf16.mxu0 %vm2795_vm1, %v2794_v9 }
 0xcbf   : > { %2557 = vmatprep.subr.bf16.mxu0 %v2794_v9 }
 0xcc5   : > { %2548 = vmatmul.mubr.msk.bf16.vlgmr.msra.gmra.mrb[36].mxu0 %vm538_vm2, %v1583_v63 }
 0xcc6   : > { %2558 = vmatpush3.bf16.xpose.msra.mxu0 %v1702_v0  ;;  %2559 = vmatprep.mubr.msk.bf16.mxu0 %vm2795_vm1, %v2794_v9 }
 0xcc7   : > { %2569 = vmatprep.subr.bf16.mxu0 %v2794_v9 }
 0xccd   : > { %2560 = vmatmul.mubr.msk.bf16.vlgmr.msra.gmra.mrb[40].mxu0 %vm538_vm2, %v1695_v1 }
 0xcce   : > { %2573 = vmatprep.mubr.msk.bf16.mxu0 %vm2795_vm1, %v2794_v9 }
 0xd88   : > { %v1402_v2 = vpop.f32.mrb[28].mxu0 }
 0xd89   : > { %v1408_v3 = vmul.f32 0.35355338, %v1402_v2  ;;  %v2525_v4 = vpop.f32.mrb[29].mxu0 }
 0xd8a   : > { %v1405_v5 = vpop.f32.mrb[30].mxu0 }
 0xd8b   : > { %v2526_v6 = vpop.f32.mrb[31].mxu0  ;;  %v1409_v7 = vadd.f32 %v1408_v3, %v3017_v45 }
 0xd8d   : > { %v1410_v8 = vsel %vm538_vm2, %v1409_v7, -inf }
 0xd8e   : > { %1411 = vmax.xlane.f32.xlu0 %v1410_v8 }
 0xd90   : > { %v1514_v10 = vpop.f32.mrb[32].mxu0 }
 0xd91   : > { %v1520_v11 = vmul.f32 0.35355338, %v1514_v10  ;;  %v2537_v12 = vpop.f32.mrb[33].mxu0 }
 0xd92   : > { %v1517_v13 = vpop.f32.mrb[34].mxu0 }
 0xd93   : > { %v2538_v23 = vpop.f32.mrb[35].mxu0  ;;  %v1521_v14 = vadd.f32 %v1520_v11, %v3017_v45 }
 0xd95   : > { %v1522_v15 = vsel %vm538_vm2, %v1521_v14, -inf }
 0xd96   : > { %1523 = vmax.xlane.f32.xlu1 %v1522_v15 }
 0xd98   : > { %v1626_v16 = vpop.f32.mrb[36].mxu0 }
 0xd99   : > { %v1632_v17 = vmul.f32 0.35355338, %v1626_v16  ;;  %v2549_v19 = vpop.f32.mrb[37].mxu0 }
 0xd9a   : > { %v1629_v20 = vpop.f32.mrb[38].mxu0 }
 0xd9b   : > { %v2550_v24 = vpop.f32.mrb[39].mxu0  ;;  %v1633_v25 = vadd.f32 %v1632_v17, %v3017_v45 }
 0xd9d   : > { %v1634_v27 = vsel %vm538_vm2, %v1633_v25, -inf }
 0xd9e   : > { %1635 = vmax.xlane.f32.xlu0 %v1634_v27 }
 0xda0   : > { %v1738_v28 = vpop.f32.mrb[40].mxu0 }
 0xda1   : > { %v1744_v30 = vmul.f32 0.35355338, %v1738_v28  ;;  %v2561_v31 = vpop.f32.mrb[41].mxu0 }
 0xda2   : > { %v1741_v32 = vpop.f32.mrb[42].mxu0 }
 0xda3   : > { %v2562_v33 = vpop.f32.mrb[43].mxu0  ;;  %v1745_v34 = vadd.f32 %v1744_v30, %v3017_v45 }
 0xda5   : > { %v1746_v35 = vsel %vm538_vm2, %v1745_v34, -inf }
 0xda6   : > { %1747 = vmax.xlane.f32.xlu0 %v1746_v35  ;;  %v2675_v35 = vld [vmem:[%s3453_s5 + $0x18] sm:$0xff]  }
 0xe1b   : > { %v1412_v36 = vpop.xlane.xlu0 %1411 }
 0xe1c   : > { %v1413_v37 = vsub.f32 %v1409_v7, %v1412_v36 }
 0xe1e   : > { %v1414_v38 = vmul.f32 1.442695, %v1413_v37 }
 0xe20   : > { %2706 = vpow2.f32 %v1414_v38 }
 0xe23   : > { %v1524_v39 = vpop.xlane.xlu1 %1523 }
 0xe24   : > { %v1525_v41 = vsub.f32 %v1521_v14, %v1524_v39 }
 0xe26   : > { %v1526_v42 = vmul.f32 1.442695, %v1525_v41 }
 0xe28   : > { %2708 = vpow2.f32 %v1526_v42 }
 0xe2a   : > { %v2707_v43 = vpop.eup %2706 }
 0xe2b   : > { %v1416_v29 = vsel %vm538_vm2, %v2707_v43, 0.0  ;;  %v1636_v46 = vpop.xlane.xlu0 %1635 }
 0xe2c   : > { %1417 = vadd.xlane.f32.xlu1 %v1416_v29  ;;  %v1637_v55 = vsub.f32 %v1633_v25, %v1636_v46 }
 0xe2e   : > { %v1638_v56 = vmul.f32 1.442695, %v1637_v55 }
 0xe32   : > { %v2709_v48 = vpop.eup %2708 }
 0xe33   : > { %v1748_v49 = vpop.xlane.xlu0 %1747  ;;  %v1528_v45 = vsel %vm538_vm2, %v2709_v48, 0.0 }
 0xe34   : > { %v1749_v50 = vsub.f32 %v1745_v34, %v1748_v49  ;;  %1529 = vadd.xlane.f32.xlu0 %v1528_v45  ;;  %v2674_v34 = vld [vmem:[%s3453_s5 + $0x10] sm:$0xff]  }
 0xe35   : > { %2570 = vmatpush3.bf16.msra.mxu0 %v2674_v34 }
 0xe36   : > { %v1750_v53 = vmul.f32 1.442695, %v1749_v50  ;;  %2571 = vmatprep.subr.bf16.mxu0 %v2794_v9 }
 0xe38   : > { %2710 = vpow2.f32 %v1750_v53 }
 0xe39   : > { %2712 = vpow2.f32 %v1638_v56  ;;  %2572 = vmatpush3.bf16.msra.mxu0 %v2675_v35 }
 0xe3a   : > { %2585 = vmatprep.subr.bf16.mxu0 %v2794_v9 }
 0xe3d   : > { %1422 = vrot.lane.b32.xlu1 %v3165_v52, %s3442_s24  ;;  %s3466_s24 = smov 24  }
 0xe42   : > { %v2711_v22 = vpop.eup %2710 }
 0xe43   : > { %v1752_v54 = vsel %vm538_vm2, %v2711_v22, 0.0  ;;  %v2713_v57 = vpop.eup %2712 }
 0xe44   : > { %1753 = vadd.xlane.f32.xlu0 %v1752_v54  ;;  %v1640_v59 = vsel %vm538_vm2, %v2713_v57, 0.0  ;;  %v1842_v54 = vrot.slane %v3161_v44, %v1026_v26 }
 0xe5a   : > { %1534 = vrot.lane.b32.xlu0 %v3165_v52, %s3461_s12 }
 0xe61   : > { %1641 = vadd.xlane.f32.xlu1 %v1640_v59 }
 0xe72   : > { %1646 = vrot.lane.b32.xlu1 %v3165_v52, %s3462_s22 }
 0xe76   : > { %1758 = vrot.lane.b32.xlu1 %v3165_v52, %s3463_s25  ;;  %s3465_s25 = smov 16  }
 0xeb9   : > { %v1418_v61 = vpop.xlane.xlu1 %1417 }
 0xeba   : > { %2714 = vrcp.f32 %v1418_v61 }
 0xebd   : > { %v1423_v62 = vpop.permute.xlu1 %1422 }
 0xebe   : > { %v1428_v63 = vsel %vm610_vm3, %v1423_v62, 0 }
 0xebf   : > { %2528 = vmatpush3.bf16.msra.mxu1 %v1428_v63 }
 0xec0   : > { %2539 = vmatprep.subr.bf16.mxu1 %v2794_v9 }
 0xec1   : > { %v1530_v1 = vpop.xlane.xlu0 %1529 }
 0xec2   : > { %2716 = vrcp.f32 %v1530_v1 }
 0xec4   : > { %v2715_v0 = vpop.eup %2714 }
 0xec5   : > { %v3224_v2 = vmul.f32 %v2715_v0, %v2707_v43 }
 0xec7   : > { %v1421_v3 = vpack.c.bf16 %v3224_v2, %v3224_v2 }
 0xec9   : > { %2530 = vmatmul.mubr.msk.bf16.vlgmr.msra.gmra.mrb[24].mxu1 %vm538_vm2, %v1421_v3 }
 0xeca   : > { %2541 = vmatprep.mubr.msk.bf16.mxu1 %vm2795_vm1, %v2794_v9 }
 0xecc   : > { %v2717_v52 = vpop.eup %2716 }
 0xecd   : > { %v3231_v5 = vmul.f32 %v2717_v52, %v2709_v48 }
 0xecf   : > { %v1533_v8 = vpack.c.bf16 %v3231_v5, %v3231_v5 }
 0xed1   : > { %v1754_v4 = vpop.xlane.xlu0 %1753 }
 0xed5   : > { %v1535_v6 = vpop.permute.xlu0 %1534 }
 0xed6   : > { %v1540_v7 = vsel %vm610_vm3, %v1535_v6, 0 }
 0xed7   : > { %2540 = vmatpush3.bf16.msra.mxu1 %v1540_v7 }
 0xed8   : > { %2551 = vmatprep.subr.bf16.mxu1 %v2794_v9 }
 0xeda   : > { %2542 = vmatmul.mubr.msk.bf16.vlgmr.msra.gmra.mrb[28].mxu1 %vm538_vm2, %v1533_v8 }
 0xedb   : > { %2553 = vmatprep.mubr.msk.bf16.mxu1 %vm2795_vm1, %v2794_v9 }
 0xeee   : > { %v1642_v10 = vpop.xlane.xlu1 %1641 }
 0xeef   : > { %2718 = vrcp.f32 %v1642_v10 }
 0xef0   : > { %2720 = vrcp.f32 %v1754_v4  ;;  %v2676_v4 = vld [vmem:[%s3417_s6 + $0x10] sm:$0xff]  }
 0xef2   : > { %v1647_v11 = vpop.permute.xlu1 %1646 }
 0xef3   : > { %v1652_v12 = vsel %vm610_vm3, %v1647_v11, 0 }
 0xef4   : > { %2552 = vmatpush3.bf16.msra.mxu1 %v1652_v12 }
 0xef5   : > { %2563 = vmatprep.subr.bf16.mxu1 %v2794_v9 }
 0xef6   : > { %v1759_v14 = vpop.permute.xlu1 %1758 }
 0xef7   : > { %v1764_v17 = vsel %vm610_vm3, %v1759_v14, 0 }
 0xef9   : > { %v2719_v13 = vpop.eup %2718 }
 0xefa   : > { %v3242_v23 = vmul.f32 %v2719_v13, %v2713_v57  ;;  %v2721_v16 = vpop.eup %2720 }
 0xefb   : > { %v3250_v19 = vmul.f32 %v2721_v16, %v2711_v22 }
 0xefc   : > { %v1645_v15 = vpack.c.bf16 %v3242_v23, %v3242_v23 }
 0xefd   : > { %v1757_v20 = vpack.c.bf16 %v3250_v19, %v3250_v19 }
 0xefe   : > { %2554 = vmatmul.mubr.msk.bf16.vlgmr.msra.gmra.mrb[32].mxu1 %vm538_vm2, %v1645_v15 }
 0xeff   : > { %2564 = vmatpush3.bf16.msra.mxu1 %v1764_v17  ;;  %2565 = vmatprep.mubr.msk.bf16.mxu1 %vm2795_vm1, %v2794_v9  ;;  %v2678_v17 = vld [vmem:[%s3418_s7 + $0x20] sm:$0xff]  }
 0xf00   : > { %2577 = vmatprep.subr.bf16.mxu1 %v2794_v9 }
 0xf06   : > { %2566 = vmatmul.mubr.msk.bf16.vlgmr.msra.gmra.mrb[36].mxu1 %vm538_vm2, %v1757_v20  ;;  %v2679_v20 = vld [vmem:[%s3418_s7 + $0x28] sm:$0xff]  }
 0xf07   : > { %2581 = vmatprep.mubr.msk.bf16.mxu1 %vm2795_vm1, %v2794_v9  ;;  %2578 = vmatpush3.bf16.msra.mxu1 %v2676_v4 }
 0xf08   : > { %2579 = vmatprep.subr.bf16.mxu1 %v2794_v9 }
 0xf9c   : > { %v1464_v24 = vpop.f32.mrb[24].mxu1 }
 0xf9d   : > { %v2531_v25 = vpop.f32.mrb[25].mxu1 }
 0xf9e   : > { %v1467_v27 = vpop.f32.mrb[26].mxu1  ;;  %v2681_v25 = vld [vmem:[%s3418_s7 + $0x38] sm:$0xff]  }
 0xf9f   : > { %v2532_v28 = vpop.f32.mrb[27].mxu1  ;;  %v1925_v27 = vrot.slane %v3161_v44, %v1109_v60 }
 0xfad   : > { %v1576_v30 = vpop.f32.mrb[28].mxu1 }
 0xfae   : > { %1824 = vrot.lane.b32.xlu0 %v1576_v30, %s3464_s13  ;;  %v2543_v31 = vpop.f32.mrb[29].mxu1 }
 0xfaf   : > { %v1579_v32 = vpop.f32.mrb[30].mxu1 }
 0xfb0   : > { %v2544_v33 = vpop.f32.mrb[31].mxu1 }
 0xfd1   : > { %v1688_v36 = vpop.f32.mrb[32].mxu1 }
 0xfd2   : > { %1828 = vrot.lane.b32.xlu1 %v1688_v36, %s3465_s25  ;;  %v2555_v37 = vpop.f32.mrb[33].mxu1 }
 0xfd3   : > { %v1691_v38 = vpop.f32.mrb[34].mxu1 }
 0xfd4   : > { %v2556_v39 = vpop.f32.mrb[35].mxu1 }
 0xfd9   : > { %v1800_v41 = vpop.f32.mrb[36].mxu1 }
 0xfda   : > { %1832 = vrot.lane.b32.xlu0 %v1800_v41, %s3466_s24  ;;  %v2567_v42 = vpop.f32.mrb[37].mxu1 }
 0xfdb   : > { %v1803_v43 = vpop.f32.mrb[38].mxu1 }
 0xfdc   : > { %v2568_v29 = vpop.f32.mrb[39].mxu1 }
0x1020   : > { %v1825_v46 = vpop.permute.xlu0 %1824 }
0x1021   : > { %v1835_v49 = vsel %vm538_vm2, %v1464_v24, %v1825_v46  ;;  %v2680_v24 = vld [vmem:[%s3418_s7 + $0x30] sm:$0xff]  }
0x1044   : > { %v1829_v48 = vpop.permute.xlu1 %1828 }
0x1045   : > { %v1836_v45 = vsel %vm1003_vm4, %v1835_v49, %v1829_v48 }
0x104c   : > { %v1833_v50 = vpop.permute.xlu0 %1832 }
0x104d   : > { %v1837_v53 = vsel %vm1005_vm5, %v1836_v45, %v1833_v50 }
0x104e   : > { %v1838_v22 = vpack.c.bf16 %v1837_v53, %v1837_v53  ;;  %v2728_v53 = vld [vmem:[%s3413_s2] ss:$0 sm:$0xff] }
0x1050   : > { %2574 = vmatmul.mubr.msk.bf16.vlgmr.msra.gmra.mrb[44].mxu0 %vm426_vm0, %v1838_v22 }
0x1051   : > { %2593 = vmatprep.mubr.msk.bf16.mxu0 %vm2795_vm1, %v2794_v9  ;;  %2586 = vmatpush3.bf16.msra.mxu0 %v2678_v17 }
0x1052   : > { %2587 = vmatprep.subr.bf16.mxu0 %v2794_v9 }
0x1055   : > { %2588 = vmatpush3.bf16.msra.mxu0 %v2679_v20 }
0x1056   : > { %2589 = vmatprep.subr.bf16.mxu0 %v2794_v9 }
0x1059   : > { %2590 = vmatpush3.bf16.msra.mxu0 %v2680_v24 }
0x105a   : > { %2591 = vmatprep.subr.bf16.mxu0 %v2794_v9 }
0x105d   : > { %2592 = vmatpush3.bf16.msra.mxu0 %v2681_v25 }
0x1123   : > { %v1892_v55 = vpop.f32.mrb[44].mxu0 }
0x1124   : > { %v1893_v56 = vadd.f32 %v1892_v55, %v1842_v54  ;;  %v2575_v57 = vpop.f32.mrb[45].mxu0 }
0x1125   : > { %v1895_v59 = vpop.f32.mrb[46].mxu0 }
0x1126   : > { %v2576_v61 = vpop.f32.mrb[47].mxu0  ;;  %v1898_v62 = vadd.f32 %v1893_v56, %v3148_v18  ;;  %v2677_v18 = vld [vmem:[%s3417_s6 + $0x18] sm:$0xff]  }
0x1127   : > { %2580 = vmatpush3.bf16.msra.mxu1 %v2677_v18 }
0x1128   : > { %v1899_v63 = vsel %vm426_vm0, %v1898_v62, 0.0  ;;  %2597 = vmatprep.subr.bf16.mxu1 %v2794_v9 }
0x1129   : > { %1900 = vadd.xlane.f32.xlu1 %v1899_v63 }
0x113a   : > { %1917 = vrot.lane.b32.xlu1 %v1842_v54, %s3467_s14 }
0x113e   : > { %2015 = vrot.lane.b32.xlu1 %v1842_v54, %s3468_s15 }
0x11b6   : > { %v1901_v0 = vpop.xlane.xlu1 %1900 }
0x11b7   : > { %v1902_v1 = vmul.f32 0.03125, %v1901_v0 }
0x11b9   : > { %v1903_v3 = vsub.f32 %v1898_v62, %v1902_v1 }
0x11ba   : > { %v1918_v13 = vpop.permute.xlu1 %1917 }
0x11bb   : > { %v1904_v52 = vmul.f32 %v1903_v3, %v1903_v3 }
0x11bd   : > { %v1905_v26 = vsel %vm426_vm0, %v1904_v52, 0.0 }
0x11be   : > { %1906 = vadd.xlane.f32.xlu0 %v1905_v26  ;;  %v2016_v21 = vpop.permute.xlu1 %2015 }
0x11d4   : > { %1913 = vrot.lane.b32.xlu0 %v1842_v54, %s3455_s30 }
0x124b   : > { %v1907_v6 = vpop.xlane.xlu0 %1906 }
0x124c   : > { %v1908_v7 = vmul.f32 0.03125, %v1907_v6 }
0x124e   : > { %v1909_v8 = vadd.f32 1e-12, %v1908_v7 }
0x124f   : > { %v1914_v11 = vpop.permute.xlu0 %1913 }
0x1250   : > { %2722 = vrsqrt.f32 %v1909_v8 }
0x125a   : > { %v2723_v10 = vpop.eup %2722 }
0x125b   : > { %v1911_v12 = vmul.f32 %v2723_v10, %v1903_v3 }
0x125d   : > { %v1916_v14 = vmul.f32 %v1914_v11, %v1911_v12 }
0x125f   : > { %v1920_v15 = vadd.f32 %v1918_v13, %v1916_v14 }
0x1261   : > { %v1921_v16 = vpack.c.bf16 %v1920_v15, %v1920_v15 }
0x1263   : > { %2582 = vmatmul.mubr.msk.bf16.vlgmr.msra.gmra.mrb[40].mxu1 %vm426_vm0, %v1921_v16 }
0x1264   : > { %2601 = vmatprep.mubr.msk.bf16.mxu1 %vm2795_vm1, %v2794_v9 }
0x1336   : > { %v1975_v28 = vpop.f32.mrb[40].mxu1 }
0x1337   : > { %v1976_v30 = vadd.f32 %v1975_v28, %v1925_v27  ;;  %v2583_v31 = vpop.f32.mrb[41].mxu1 }
0x1338   : > { %v1978_v32 = vpop.f32.mrb[42].mxu1 }
0x1339   : > { %v1981_v33 = vmul.f32 %v1976_v30, %v1976_v30  ;;  %v2584_v34 = vpop.f32.mrb[43].mxu1 }
0x133b   : > { %v1982_v35 = vmul.f32 %v1981_v33, %v1976_v30 }
0x133d   : > { %v1983_v36 = vmul.f32 0.044715, %v1982_v35 }
0x133f   : > { %v1984_v37 = vadd.f32 %v1983_v36, %v1976_v30 }
0x1341   : > { %v1985_v38 = vmul.f32 0.7978846, %v1984_v37 }
0x1343   : > { %2724 = vtanh.f32 %v1985_v38 }
0x134d   : > { %v2725_v39 = vpop.eup %2724 }
0x134e   : > { %v1987_v41 = vadd.f32 1.0, %v2725_v39 }
0x1350   : > { %v1988_v42 = vmul.f32 0.5, %v1987_v41 }
0x1352   : > { %v1989_v43 = vmul.f32 %v1988_v42, %v1976_v30 }
0x1354   : > { %v1990_v29 = vpack.c.bf16 %v1989_v43, %v1989_v43 }
0x1356   : > { %2594 = vmatmul.mubr.msk.bf16.vlgmr.msra.gmra.mrb[48].mxu0 %vm1203_vm6, %v1990_v29 }
0x1429   : > { %v2055_v60 = vpop.f32.mrb[48].mxu0 }
0x142a   : > { %v2056_v44 = vadd.f32 %v2055_v60, %v2016_v21  ;;  %v2595_v46 = vpop.f32.mrb[49].mxu0 }
0x142b   : > { %v2058_v48 = vpop.f32.mrb[50].mxu0 }
0x142c   : > { %v2596_v49 = vpop.f32.mrb[51].mxu0  ;;  %v2061_v45 = vadd.f32 %v2056_v44, %v1920_v15 }
0x142e   : > { %v2062_v50 = vsel %vm426_vm0, %v2061_v45, 0.0 }
0x142f   : > { %2063 = vadd.xlane.f32.xlu0 %v2062_v50 }
0x1445   : > { %2076 = vrot.lane.b32.xlu0 %v1925_v27, %s3467_s14 }
0x1449   : > { %991 = vrot.lane.b32.xlu0 %v3049_v47, %s3464_s13  ;;  %v2086_v47 = vld [vmem:[%s3414_s3] sm:$0xff] }
0x144d   : > { %999 = vrot.lane.b32.xlu0 %v3068_v58, %s3466_s24  ;;  %v2087_v58 = vld [vmem:[%s3414_s3 + $0x8] sm:$0xff] }
0x1451   : > { %1811 = vrot.lane.b32.xlu0 %v3242_v23, %s3465_s25  ;;  %v2091_v23 = vpack.c.bf16 %v2087_v58, %v2086_v47 }
0x1453   : > { %2598 = vmatpush3.bf16.msra.mxu1 %v2091_v23 }
0x1454   : > { %2599 = vmatprep.subr.bf16.mxu1 %v2794_v9 }
0x1455   : > { %2093 = vrot.lane.b32.xlu0 %v2728_v53, %s3467_s14 }
0x14bc   : > { %v2064_v22 = vpop.xlane.xlu0 %2063 }
0x14bd   : > { %v2065_v54 = vmul.f32 0.03125, %v2064_v22 }
0x14bf   : > { %v2066_v55 = vsub.f32 %v2061_v45, %v2065_v54 }
0x14c0   : > { %v2077_v61 = vpop.permute.xlu0 %2076 }
0x14c1   : > { %v2067_v56 = vmul.f32 %v2066_v55, %v2066_v55 }
0x14c3   : > { %v2068_v57 = vsel %vm426_vm0, %v2067_v56, 0.0 }
0x14c4   : > { %2069 = vadd.xlane.f32.xlu1 %v2068_v57  ;;  %v992_v0 = vpop.permute.xlu0 %991 }
0x14c5   : > { %v1002_v9 = vsel %vm538_vm2, %v3039_v40, %v992_v0 }
0x14c8   : > { %v1000_v52 = vpop.permute.xlu0 %999 }
0x14cc   : > { %v1812_v7 = vpop.permute.xlu0 %1811 }
0x14d0   : > { %v2094_v16 = vpop.permute.xlu0 %2093 }
0x14d5   : > { %2080 = vrot.lane.b32.xlu1 %v1925_v27, %s3468_s15  ;;  %s3369_s15 = scalar_lea.hbm %s3422_s11, %s2362_s1 }
0x14d9   : > { %995 = vrot.lane.b32.xlu1 %v3057_v51, %s3465_s25  ;;  %v2088_v51 = vld [vmem:[%s3414_s3 + $0x10] sm:$0xff] }
0x14dd   : > { %1807 = vrot.lane.b32.xlu1 %v3231_v5, %s3464_s13  ;;  %v2089_v5 = vld [vmem:[%s3414_s3 + $0x18] sm:$0xff]  ;;  %s2810_s13 = smov [#allocation2]  }
0x14de   : > { %v2092_v59 = vpack.c.bf16 %v2089_v5, %v2088_v51  ;;  %s2733_s22 = sshll.u32 %s2810_s13, 4  ;;  %s2734_s22 = int_to_ptr.vmem [resolvable:$false] %s2733_s22 }
0x14e0   : > { %2600 = vmatpush3.bf16.msra.mxu1 %v2092_v59 }
0x14e1   : > { %1815 = vrot.lane.b32.xlu1 %v3250_v19, %s3466_s24  ;;  %s2365_s24 = sshll.u32 %s2921_s29, 4  ;;  %s401_s29 = sand.u32 1, %s2783_s18  }
0x14e2   : > { %s419_s5 = scalar_lea.vmem %s3421_s10, %s2365_s24  ;;  %s402_s30 = scalar_lea.vmem [#allocation2], %s401_s29 }
0x14e3   : > { %s2170_s14 = sshll.u32 %s402_s30, 4  ;;  %s2152_s21 = scalar_lea.sflag [#allocation3], %s401_s29  ;;  %s3371_s14 = int_to_ptr.vmem [resolvable:$true] %s2170_s14 }
0x14e4   : > { %s2735_s24 = scalar_lea.vmem %s2734_s22, 32  ;;  %p2736_p0 = scmp.lt.s32.totalorder %s3371_s14, %s2734_s22 }
0x1551   : > { %v2070_v62 = vpop.xlane.xlu1 %2069 }
0x1552   : > { %v2071_v63 = vmul.f32 0.03125, %v2070_v62 }
0x1554   : > { %v2072_v1 = vadd.f32 1e-12, %v2071_v63 }
0x1555   : > { %v2081_v19 = vpop.permute.xlu1 %2080 }
0x1556   : > { %2726 = vrsqrt.f32 %v2072_v1 }
0x1559   : > { %v996_v3 = vpop.permute.xlu1 %995 }
0x155a   : > { %v1004_v26 = vsel %vm1003_vm4, %v1002_v9, %v996_v3 }
0x155b   : > { %v1006_v4 = vsel %vm1005_vm5, %v1004_v26, %v1000_v52 }
0x155c   : > { %1007 = vst.msk [vmem:[%s419_s5] sm:$0xff] %vm426_vm0, %v1006_v4 }
0x155d   : > { %v1808_v18 = vpop.permute.xlu1 %1807 }
0x155e   : > { %v1818_v6 = vsel %vm538_vm2, %v3224_v2, %v1808_v18 }
0x155f   : > { %v1819_v11 = vsel %vm1003_vm4, %v1818_v6, %v1812_v7 }
0x1560   : > { %v2727_v40 = vpop.eup %2726 }
0x1561   : > { %v2074_v8 = vmul.f32 %v2727_v40, %v2066_v55  ;;  %v1816_v10 = vpop.permute.xlu1 %1815 }
0x1562   : > { %v1820_v12 = vsel %vm1005_vm5, %v1819_v11, %v1816_v10 }
0x1563   : > { %v2079_v13 = vmul.f32 %v2077_v61, %v2074_v8  ;;  %2348 = vst.msk [vmem:[%s419_s5 + $0x8] sm:$0xff] %vm426_vm0, %v1820_v12 }
0x1565   : > { %v2083_v14 = vadd.f32 %v2081_v19, %v2079_v13 }
0x1567   : > { %2360 = vst.msk [vmem:[%s2951_s16 + $0x10] sm:$0xff] %vm426_vm0, %v2083_v14  ;;  %v2090_v15 = vpack.c.bf16 %v2083_v14, %v2083_v14  ;;  %s2729_s16 = scalar_lea.vmem %s3371_s14, 16 }
0x1568   : > { %p2730_p11 = scmp.ne.s32.totalorder %s3371_s14, %s2729_s16  ;;  %p2737_p1 = scmp.lt.s32.totalorder %s2735_s24, %s2729_s16 }
0x1569   : > { %2602 = vmatmul.mubr.msk.bf16.vlgmr.msra.gmra.mrb[44].mxu1 %vm426_vm0, %v2090_v15 }
0x156a   : > { %p2731_p12 = pnand %p2730_p11, %p2909_p5  ;;  %p2738_p2 = por %p2737_p1, %p2736_p0 }
0x156c   : > { %p2732_p13 = pneg %p2731_p12 }
0x156e   : > { %p2739_p3 = pnand %p2738_p2, %p2732_p13 }
0x163c   : > { %v2133_v2 = vpop.f32.mrb[44].mxu1 }
0x163d   : > { %v2134_v17 = vadd.f32 %v2133_v2, %v2094_v16  ;;  %v2603_v20 = vpop.f32.mrb[45].mxu1 }
0x163e   : > { %v2136_v24 = vpop.f32.mrb[46].mxu1 }
0x163f   : > { %v2604_v25 = vpop.f32.mrb[47].mxu1  ;;  %2140 = vst.msk [vmem:[%s402_s30] sm:$0x1] %vm2139_vm7, %v2134_v17 }
0x1640   : > { %2742 = shalt.err (!%p2739_p3)
}
0x1641   : > { %s2743_s0 = scalar_lea.hbm %s3369_s15, 16  ;;  %s2747_s29 = scalar_lea.hbm %s3422_s11, 32 }
0x1642   : > { %p2744_p4 = scmp.ne.s32.totalorder %s3369_s15, %s2743_s0  ;;  %p2748_p9 = scmp.lt.u32.totalorder %s3369_s15, %s3422_s11 }
0x1643   : > { %p2749_p10 = scmp.lt.u32.totalorder %s2747_s29, %s2743_s0  ;;  %p2751_p12 = scmp.lt.u32.totalorder %s2743_s0, %s3369_s15 }
0x1644   : > { %p2745_p7 = pnand %p2744_p4, %p2909_p5 }
0x1645   : > { %p2750_p11 = por %p2749_p10, %p2748_p9 }
0x1646   : > { %p2746_p8 = pneg %p2745_p7 }
0x1647   : > { %p2752_p13 = por %p2751_p12, %p2750_p11 }
0x1649   : > { %p2753_p0 = pnand %p2752_p13, %p2746_p8 }
0x164b   : > { %2756 = shalt.err (!%p2753_p0)
}
0x164c   : > { %2606 = dma.vmem_to_hbm [thread:$0]  (%p2909_p5), %s3371_s14, 16, %s3369_s15, %s2152_s21  }
0x164d PF: > { %p2612_p1 = scmp.ge.s32.totalorder %s2791_s20, 2  ;;  %s2198_s12 = sand.u32 1, %s2779_s17  }
0x164e   : > { %s2199_s25 = scalar_lea.sflag [#allocation3], %s2198_s12 }
0x164f   : > { %p2609_p2 = pnand %p2612_p1, %p2913_p6 }
0x1651   : > { %2774 = dma.done.wait (!%p2609_p2), %s2199_s25, 16  }
0x1652   : > { %2776 = vsyncadd (!%p2609_p2), %s2199_s25, 4294967280  ;;  %p22_p3 = scmp.ge.s32.totalorder %s2896_s23, 4   ;;  %s3469_s17 = smov %s2783_s18 }
0x1653   : > { %s3470_s18 = smov %s2787_s19  ;;  %s3471_s19 = smov %s2907_s26 }
0x1654   : > { %s3472_s20 = smov %s2896_s23  ;;  %24 = sbr.rel (!%p22_p3) target bundleno = 8 (0x8), region = 126 }
0x165b   :  { %2203 = vsyncpa [#allocation3], 1 }
0x165c   :  { %2205 = vsyncpa [#allocation3 + $0x1], 1 }

</bundles_post_ra>
